<compile_context>
chip_gen: v5e
topology: v5e:2x2
jax: 0.10.0
libtpu: 0.0.40
codegen_flags: <defaults>
</compile_context>

<pallas_src>
import jax
import jax.numpy as jnp
from jax.experimental import pallas as pl
from jax.experimental.pallas import tpu as pltpu

IN_FEATURES = 28 * 28   # 784
HIDDEN1 = 500
HIDDEN2 = 256


# ----------------------------------------------------------------------------
# Fused 2-layer MLP kernel: (x @ W1 + b1).relu() @ W2 + b2, then relu.
# ----------------------------------------------------------------------------
def _mlp_kernel(x_ref, w1_ref, b1_ref, w2_ref, b2_ref, o_ref):
    # x: (tm, 784) f32;  w1: (784, 500) bf16;  w2: (500, 256) bf16
    x = x_ref[...].astype(jnp.bfloat16)
    h = jnp.dot(x, w1_ref[...], preferred_element_type=jnp.float32)
    h = jnp.maximum(h + b1_ref[...], 0.0)                       # f32 epilogue
    y = jnp.dot(h.astype(jnp.bfloat16), w2_ref[...],
                preferred_element_type=jnp.float32)
    y = jnp.maximum(y + b2_ref[...], 0.0)
    o_ref[...] = y


def mlp_forward(x, params, *, tm=256):
    """Equivalent of MLPNET.forward: x.view(-1, 784) -> fc1 -> relu -> fc2 -> relu."""
    x2 = x.reshape(-1, IN_FEATURES).astype(jnp.float32)          # torch .view(-1, 784)
    M = x2.shape[0]

    # Row tile: multiple of 8 (sublane), capped at tm; pad M up to a whole tile.
    tile = min(tm, max(8, ((M + 7) // 8) * 8))
    m_pad = ((M + tile - 1) // tile) * tile
    if m_pad != M:
        x2 = jnp.pad(x2, ((0, m_pad - M), (0, 0)))

    w1 = params["w1"].astype(jnp.bfloat16)                       # (784, 500)
    w2 = params["w2"].astype(jnp.bfloat16)                       # (500, 256)
    b1 = params["b1"].reshape(1, HIDDEN1).astype(jnp.float32)
    b2 = params["b2"].reshape(1, HIDDEN2).astype(jnp.float32)

    out = pl.pallas_call(
        _mlp_kernel,
        out_shape=jax.ShapeDtypeStruct((m_pad, HIDDEN2), jnp.float32),
        grid=(m_pad // tile,),
        in_specs=[
            pl.BlockSpec((tile, IN_FEATURES), lambda i: (i, 0)),   # x row tile
            pl.BlockSpec((IN_FEATURES, HIDDEN1), lambda i: (0, 0)),  # W1 resident
            pl.BlockSpec((1, HIDDEN1), lambda i: (0, 0)),            # b1
            pl.BlockSpec((HIDDEN1, HIDDEN2), lambda i: (0, 0)),      # W2 resident
            pl.BlockSpec((1, HIDDEN2), lambda i: (0, 0)),            # b2
        ],
        out_specs=pl.BlockSpec((tile, HIDDEN2), lambda i: (i, 0)),
        compiler_params=pltpu.CompilerParams(
            dimension_semantics=("parallel",)),
    )(x2, w1, b1, w2, b2)
    return out[:M]


# ----------------------------------------------------------------------------
# Deterministic parameters (weights stored (in, out) so x @ W == torch x @ W.T)
# ----------------------------------------------------------------------------
def make_params(key):
    k1, k2, k3, k4, k5, k6 = jax.random.split(key, 6)
    s1 = 1.0 / (IN_FEATURES ** 0.5)
    s2 = 1.0 / (HIDDEN1 ** 0.5)
    s3 = 1.0 / (HIDDEN2 ** 0.5)
    return {
        "w1": s1 * jax.random.normal(k1, (IN_FEATURES, HIDDEN1), jnp.float32),
        "b1": s1 * jax.random.normal(k2, (HIDDEN1,), jnp.float32),
        "w2": s2 * jax.random.normal(k3, (HIDDEN1, HIDDEN2), jnp.float32),
        "b2": s2 * jax.random.normal(k4, (HIDDEN2,), jnp.float32),
        # fc3 exists in the PyTorch module but is never used by forward().
        "w3": s3 * jax.random.normal(k5, (HIDDEN2, 10), jnp.float32),
        "b3": s3 * jax.random.normal(k6, (10,), jnp.float32),
    }


def _reference_forward(x, params):
    x2 = x.reshape(-1, IN_FEATURES).astype(jnp.float32)
    h = jnp.maximum(x2 @ params["w1"] + params["b1"], 0.0)
    return jnp.maximum(h @ params["w2"] + params["b2"], 0.0)


if __name__ == "__main__":
    key = jax.random.PRNGKey(0)
    kx, kp = jax.random.split(key)

    # MNIST-like input: batch=8, (1, 28, 28) images; forward flattens to (8, 784).
    x = jax.random.normal(kx, (8, 1, 28, 28), jnp.float32)
    params = make_params(kp)

    fwd = jax.jit(lambda x, p: mlp_forward(x, p))
    y = fwd(x, params)
    jax.block_until_ready(y)

    assert y.shape == (8, HIDDEN2)
    # Correctness vs pure-JAX reference (loose tolerance: bf16 MXU matmuls).
    y_ref = _reference_forward(x, params)
    assert jnp.allclose(y, y_ref, rtol=5e-2, atol=5e-2)

    print("KERNEL_OK")
</pallas_src>

<mosaic_0001>
module attributes {stable_mosaic.version = 11 : i64} {
  func.func @_mlp_kernel(%arg0: i32, %arg1: memref<8x784xf32, #tpu.memory_space<vmem>>, %arg2: memref<784x500xbf16, #tpu.memory_space<vmem>>, %arg3: memref<1x500xf32, #tpu.memory_space<vmem>>, %arg4: memref<500x256xbf16, #tpu.memory_space<vmem>>, %arg5: memref<1x256xf32, #tpu.memory_space<vmem>>, %arg6: memref<8x256xf32, #tpu.memory_space<vmem>>) attributes {dimension_semantics = [#tpu.dimension_semantics<parallel>], iteration_bounds = array<i64: 1>, scalar_prefetch = 0 : i64, scratch_operands = 0 : i64, tpu.core_type = #tpu.core_type<tc>, window_params = [{transform_indices = @transform_0, window_bounds = array<i64: 8, 784>}, {pipeline_mode = #tpu.pipeline_mode<synchronous>, transform_indices = @transform_1, window_bounds = array<i64: 784, 500>}, {pipeline_mode = #tpu.pipeline_mode<synchronous>, transform_indices = @transform_2, window_bounds = array<i64: 1, 500>}, {pipeline_mode = #tpu.pipeline_mode<synchronous>, transform_indices = @transform_3, window_bounds = array<i64: 500, 256>}, {pipeline_mode = #tpu.pipeline_mode<synchronous>, transform_indices = @transform_4, window_bounds = array<i64: 1, 256>}, {transform_indices = @transform_5, window_bounds = array<i64: 8, 256>}]} {
    %c0 = arith.constant 0 : index
    %c0_0 = arith.constant 0 : index
    %0 = vector.load %arg1[%c0, %c0_0] : memref<8x784xf32, #tpu.memory_space<vmem>>, vector<8x784xf32>
    %1 = arith.truncf %0 : vector<8x784xf32> to vector<8x784xbf16>
    %c0_1 = arith.constant 0 : index
    %c0_2 = arith.constant 0 : index
    %2 = vector.load %arg2[%c0_1, %c0_2] : memref<784x500xbf16, #tpu.memory_space<vmem>>, vector<784x500xbf16>
    %cst = arith.constant dense<0.000000e+00> : vector<8x500xf32>
    %3 = tpu.matmul %1, %2, %cst {dimension_numbers = #tpu.dot_dimension_numbers<[1], [0], [0], [1], [0, 0, 1, 1], [], []>} : vector<8x784xbf16>, vector<784x500xbf16>, vector<8x500xf32> -> vector<8x500xf32>
    %c0_3 = arith.constant 0 : index
    %c0_4 = arith.constant 0 : index
    %4 = vector.load %arg3[%c0_3, %c0_4] : memref<1x500xf32, #tpu.memory_space<vmem>>, vector<1x500xf32>
    %5 = vector.broadcast %4 : vector<1x500xf32> to vector<8x500xf32>
    %6 = arith.addf %3, %5 : vector<8x500xf32>
    %cst_5 = arith.constant 0.000000e+00 : f32
    %7 = vector.broadcast %cst_5 : f32 to vector<8x500xf32>
    %8 = arith.maximumf %6, %7 : vector<8x500xf32>
    %9 = arith.truncf %8 : vector<8x500xf32> to vector<8x500xbf16>
    %c0_6 = arith.constant 0 : index
    %c0_7 = arith.constant 0 : index
    %10 = vector.load %arg4[%c0_6, %c0_7] : memref<500x256xbf16, #tpu.memory_space<vmem>>, vector<500x256xbf16>
    %cst_8 = arith.constant dense<0.000000e+00> : vector<8x256xf32>
    %11 = tpu.matmul %9, %10, %cst_8 {dimension_numbers = #tpu.dot_dimension_numbers<[1], [0], [0], [1], [0, 0, 1, 1], [], []>} : vector<8x500xbf16>, vector<500x256xbf16>, vector<8x256xf32> -> vector<8x256xf32>
    %c0_9 = arith.constant 0 : index
    %c0_10 = arith.constant 0 : index
    %12 = vector.load %arg5[%c0_9, %c0_10] : memref<1x256xf32, #tpu.memory_space<vmem>>, vector<1x256xf32>
    %13 = vector.broadcast %12 : vector<1x256xf32> to vector<8x256xf32>
    %14 = arith.addf %11, %13 : vector<8x256xf32>
    %cst_11 = arith.constant 0.000000e+00 : f32
    %15 = vector.broadcast %cst_11 : f32 to vector<8x256xf32>
    %16 = arith.maximumf %14, %15 : vector<8x256xf32>
    %c0_12 = arith.constant 0 : index
    %c0_13 = arith.constant 0 : index
    %17 = vector.load %arg6[%c0_12, %c0_13] : memref<8x256xf32, #tpu.memory_space<vmem>>, vector<8x256xf32>
    tpu.vector_store %arg6[%c0_12, %c0_13], %16 {strides = array<i32>} : memref<8x256xf32, #tpu.memory_space<vmem>>, vector<8x256xf32>,
    return
  }
  func.func @transform_0(%arg0: i32) -> (i32, i32) {
    %c0_i32 = arith.constant 0 : i32
    %c0_i32_0 = arith.constant 0 : i32
    return %arg0, %c0_i32 : i32, i32
  }
  func.func @transform_1(%arg0: i32) -> (i32, i32) {
    %c0_i32 = arith.constant 0 : i32
    %c0_i32_0 = arith.constant 0 : i32
    %c0_i32_1 = arith.constant 0 : i32
    return %c0_i32, %c0_i32_0 : i32, i32
  }
  func.func @transform_2(%arg0: i32) -> (i32, i32) {
    %c0_i32 = arith.constant 0 : i32
    %c0_i32_0 = arith.constant 0 : i32
    %c0_i32_1 = arith.constant 0 : i32
    return %c0_i32, %c0_i32_0 : i32, i32
  }
  func.func @transform_3(%arg0: i32) -> (i32, i32) {
    %c0_i32 = arith.constant 0 : i32
    %c0_i32_0 = arith.constant 0 : i32
    %c0_i32_1 = arith.constant 0 : i32
    return %c0_i32, %c0_i32_0 : i32, i32
  }
  func.func @transform_4(%arg0: i32) -> (i32, i32) {
    %c0_i32 = arith.constant 0 : i32
    %c0_i32_0 = arith.constant 0 : i32
    %c0_i32_1 = arith.constant 0 : i32
    return %c0_i32, %c0_i32_0 : i32, i32
  }
  func.func @transform_5(%arg0: i32) -> (i32, i32) {
    %c0_i32 = arith.constant 0 : i32
    %c0_i32_0 = arith.constant 0 : i32
    return %arg0, %c0_i32 : i32, i32
  }
}

</mosaic_0001>

<bundles_post_ra>
// kernel: _lambda_.1
= control target key start
LH: loop header
LB: loop body
LE: loop exit
PB: predicated region body
PF: predicated region fallthrough
CT: control target
= control target key end

     0   :  { %vm1222_vm0 = vcmask 130048   ;;  %s5135_s0 = inlined_call_operand.vmem [shape: f32[8,784], index: 0, kind: input, shape index: {}]   ;;  %s5136_s1 = inlined_call_operand.vmem [shape: bf16[784,500], index: 1, kind: input, shape index: {}]   ;;  %s5137_s2 = inlined_call_operand.vmem [shape: f32[1,500], index: 2, kind: input, shape index: {}]   ;;  %s5138_s3 = inlined_call_operand.vmem [shape: bf16[500,256], index: 3, kind: input, shape index: {}]   ;;  %s5139_s4 = inlined_call_operand.vmem [shape: f32[1,256], index: 4, kind: input, shape index: {}]   ;;  %s5140_s5 = inlined_call_operand.hbm [shape: f32[8,256], index: 5, kind: output, shape index: {}]  }
   0x1   :  { %v2231_v0 = vld [vmem:[%s5136_s1 + $0xe0] sm:$0xf]  ;;  %v3185_v1 = vld [vmem:[%s5136_s1 + $0xec] sm:$0xf0] }
   0x2   :  { %v2359_v2 = vld [vmem:[%s5136_s1 + $0x1e0] sm:$0xf]  ;;  %v2232_v3 = vor.u32 %v3185_v1, %v2231_v0  ;;  %v3217_v4 = vld [vmem:[%s5136_s1 + $0x1ec] sm:$0xf0] }
   0x3   :  { %v2487_v5 = vld [vmem:[%s5136_s1 + $0x2e0] sm:$0xf]  ;;  %v3249_v6 = vld [vmem:[%s5136_s1 + $0x2ec] sm:$0xf0]  ;;  %v2360_v7 = vor.u32 %v3217_v4, %v2359_v2 }
   0x4   :  { %v2488_v8 = vor.u32 %v3249_v6, %v2487_v5  ;;  %v2615_v9 = vld [vmem:[%s5136_s1 + $0x3e0] sm:$0xf]  ;;  %v3281_v10 = vld [vmem:[%s5136_s1 + $0x3ec] sm:$0xf0]  ;;  %1226 = vmatpush.bf16.msra.mxu0 %v2232_v3 }
   0x5   :  { %v2215_v11 = vld [vmem:[%s5136_s1 + $0xc0] sm:$0xf]  ;;  %v2616_v12 = vor.u32 %v3281_v10, %v2615_v9  ;;  %v3181_v13 = vld [vmem:[%s5136_s1 + $0xcc] sm:$0xf0]  ;;  %1239 = vmatpush.bf16.msra.mxu1 %v2360_v7 }
   0x6   :  { %v2343_v14 = vld [vmem:[%s5136_s1 + $0x1c0] sm:$0xf]  ;;  %v3213_v15 = vld [vmem:[%s5136_s1 + $0x1cc] sm:$0xf0]  ;;  %1252 = vmatpush.bf16.msra.mxu2 %v2488_v8  ;;  %v2216_v16 = vor.u32 %v3181_v13, %v2215_v11 }
   0x7   :  { %v2344_v17 = vor.u32 %v3213_v15, %v2343_v14  ;;  %v2471_v18 = vld [vmem:[%s5136_s1 + $0x2c0] sm:$0xf]  ;;  %v3245_v19 = vld [vmem:[%s5136_s1 + $0x2cc] sm:$0xf0]  ;;  %1265 = vmatpush.bf16.msra.mxu3 %v2616_v12 }
   0x8   :  { %v2599_v20 = vld [vmem:[%s5136_s1 + $0x3c0] sm:$0xf]  ;;  %v2472_v21 = vor.u32 %v3245_v19, %v2471_v18  ;;  %v3277_v22 = vld [vmem:[%s5136_s1 + $0x3cc] sm:$0xf0]  ;;  %1227 = vmatpush.bf16.msra.mxu0 %v2216_v16 }
   0x9   :  { %v2199_v23 = vld [vmem:[%s5136_s1 + $0xa0] sm:$0xf]  ;;  %v3177_v24 = vld [vmem:[%s5136_s1 + $0xac] sm:$0xf0]  ;;  %v2600_v25 = vor.u32 %v3277_v22, %v2599_v20  ;;  %1240 = vmatpush.bf16.msra.mxu1 %v2344_v17 }
   0xa   :  { %v2327_v26 = vld [vmem:[%s5136_s1 + $0x1a0] sm:$0xf]  ;;  %v3209_v27 = vld [vmem:[%s5136_s1 + $0x1ac] sm:$0xf0]  ;;  %v2200_v29 = vor.u32 %v3177_v24, %v2199_v23  ;;  %1253 = vmatpush.bf16.msra.mxu2 %v2472_v21 }
   0xb   :  { %v2455_v28 = vld [vmem:[%s5136_s1 + $0x2a0] sm:$0xf]  ;;  %v3241_v30 = vld [vmem:[%s5136_s1 + $0x2ac] sm:$0xf0]  ;;  %v2328_v33 = vor.u32 %v3209_v27, %v2327_v26  ;;  %1266 = vmatpush.bf16.msra.mxu3 %v2600_v25 }
   0xc   :  { %v2583_v31 = vld [vmem:[%s5136_s1 + $0x3a0] sm:$0xf]  ;;  %v3273_v32 = vld [vmem:[%s5136_s1 + $0x3ac] sm:$0xf0]  ;;  %v2456_v34 = vor.u32 %v3241_v30, %v2455_v28  ;;  %1228 = vmatpush.bf16.msra.mxu0 %v2200_v29 }
   0xd   :  { %v2183_v35 = vld [vmem:[%s5136_s1 + $0x80] sm:$0xf]  ;;  %v3173_v36 = vld [vmem:[%s5136_s1 + $0x8c] sm:$0xf0]  ;;  %v2584_v38 = vor.u32 %v3273_v32, %v2583_v31  ;;  %1241 = vmatpush.bf16.msra.mxu1 %v2328_v33  ;;  %v3183_v33 = vld [vmem:[%s5136_s1 + $0xe4] sm:$0xf] }
   0xe   :  { %v2311_v37 = vld [vmem:[%s5136_s1 + $0x180] sm:$0xf]  ;;  %v3205_v39 = vld [vmem:[%s5136_s1 + $0x18c] sm:$0xf0]  ;;  %v2184_v44 = vor.u32 %v3173_v36, %v2183_v35  ;;  %1254 = vmatpush.bf16.msra.mxu2 %v2456_v34  ;;  %v2233_v34 = vld [vmem:[%s5136_s1 + $0xf0] sm:$0xf0] }
   0xf   :  { %v2439_v40 = vld [vmem:[%s5136_s1 + $0x280] sm:$0xf]  ;;  %v3237_v41 = vld [vmem:[%s5136_s1 + $0x28c] sm:$0xf0]  ;;  %v2312_v45 = vor.u32 %v3205_v39, %v2311_v37  ;;  %1267 = vmatpush.bf16.msra.mxu3 %v2584_v38 }
  0x10   :  { %v2567_v42 = vld [vmem:[%s5136_s1 + $0x380] sm:$0xf]  ;;  %v3269_v43 = vld [vmem:[%s5136_s1 + $0x38c] sm:$0xf0]  ;;  %v2440_v46 = vor.u32 %v3237_v41, %v2439_v40  ;;  %1229 = vmatpush.bf16.msra.mxu0 %v2184_v44  ;;  %v2361_v44 = vld [vmem:[%s5136_s1 + $0x1f0] sm:$0xf0] }
  0x11   :  { %v2167_v47 = vld [vmem:[%s5136_s1 + $0x60] sm:$0xf]  ;;  %v3169_v48 = vld [vmem:[%s5136_s1 + $0x6c] sm:$0xf0]  ;;  %v2568_v50 = vor.u32 %v3269_v43, %v2567_v42  ;;  %1242 = vmatpush.bf16.msra.mxu1 %v2312_v45  ;;  %v3215_v43 = vld [vmem:[%s5136_s1 + $0x1e4] sm:$0xf] }
  0x12   :  { %v2295_v49 = vld [vmem:[%s5136_s1 + $0x160] sm:$0xf]  ;;  %v3201_v51 = vld [vmem:[%s5136_s1 + $0x16c] sm:$0xf0]  ;;  %v2168_v56 = vor.u32 %v3169_v48, %v2167_v47  ;;  %1255 = vmatpush.bf16.msra.mxu2 %v2440_v46  ;;  %v25_v45 = vld [vmem:[%s5135_s0 + $0x18] sm:$0xff]  ;;  %v2236_v47 = vor.u32 %v3183_v33, %v2233_v34 }
  0x13   :  { %v2423_v52 = vld [vmem:[%s5136_s1 + $0x260] sm:$0xf]  ;;  %v3233_v53 = vld [vmem:[%s5136_s1 + $0x26c] sm:$0xf0]  ;;  %v2296_v57 = vor.u32 %v3201_v51, %v2295_v49  ;;  %1268 = vmatpush.bf16.msra.mxu3 %v2568_v50 }
  0x14   :  { %v2551_v54 = vld [vmem:[%s5136_s1 + $0x360] sm:$0xf]  ;;  %v3265_v55 = vld [vmem:[%s5136_s1 + $0x36c] sm:$0xf0]  ;;  %v2424_v58 = vor.u32 %v3233_v53, %v2423_v52  ;;  %1230 = vmatpush.bf16.msra.mxu0 %v2168_v56  ;;  %v3179_v53 = vld [vmem:[%s5136_s1 + $0xc4] sm:$0xf] }
  0x15   :  { %v2151_v59 = vld [vmem:[%s5136_s1 + $0x40] sm:$0xf]  ;;  %v3165_v60 = vld [vmem:[%s5136_s1 + $0x4c] sm:$0xf0]  ;;  %v2552_v62 = vor.u32 %v3265_v55, %v2551_v54  ;;  %1243 = vmatpush.bf16.msra.mxu1 %v2296_v57  ;;  %v2217_v54 = vld [vmem:[%s5136_s1 + $0xd0] sm:$0xf0]  ;;  %v3724_v57 = vpack.c.bf16 %v25_v45, %v25_v45 }
  0x16   :  { %v2279_v61 = vld [vmem:[%s5136_s1 + $0x140] sm:$0xf]  ;;  %v3197_v63 = vld [vmem:[%s5136_s1 + $0x14c] sm:$0xf0]  ;;  %v2152_v4 = vor.u32 %v3165_v60, %v2151_v59  ;;  %1256 = vmatpush.bf16.msra.mxu2 %v2424_v58  ;;  %v23_v58 = vld [vmem:[%s5135_s0 + $0x8] sm:$0xff]  ;;  %v2364_v59 = vor.u32 %v3215_v43, %v2361_v44 }
  0x17   :  { %v2407_v0 = vld [vmem:[%s5136_s1 + $0x240] sm:$0xf]  ;;  %v3229_v1 = vld [vmem:[%s5136_s1 + $0x24c] sm:$0xf0]  ;;  %v2280_v5 = vor.u32 %v3197_v63, %v2279_v61  ;;  %1269 = vmatpush.bf16.msra.mxu3 %v2552_v62  ;;  %v3211_v61 = vld [vmem:[%s5136_s1 + $0x1c4] sm:$0xf] }
  0x18   :  { %v2535_v2 = vld [vmem:[%s5136_s1 + $0x340] sm:$0xf]  ;;  %v3261_v3 = vld [vmem:[%s5136_s1 + $0x34c] sm:$0xf0]  ;;  %v2408_v6 = vor.u32 %v3229_v1, %v2407_v0  ;;  %1231 = vmatpush.bf16.msra.mxu0 %v2152_v4  ;;  %v2345_v62 = vld [vmem:[%s5136_s1 + $0x1d0] sm:$0xf0]  ;;  %v2220_v0 = vor.u32 %v3179_v53, %v2217_v54 }
  0x19   :  { %v2135_v7 = vld [vmem:[%s5136_s1 + $0x20] sm:$0xf]  ;;  %v3161_v8 = vld [vmem:[%s5136_s1 + $0x2c] sm:$0xf0]  ;;  %v2536_v10 = vor.u32 %v3261_v3, %v2535_v2  ;;  %1244 = vmatpush.bf16.msra.mxu1 %v2280_v5  ;;  %v3175_v5 = vld [vmem:[%s5136_s1 + $0xa4] sm:$0xf] }
  0x1a   :  { %v2263_v9 = vld [vmem:[%s5136_s1 + $0x120] sm:$0xf]  ;;  %v3193_v11 = vld [vmem:[%s5136_s1 + $0x12c] sm:$0xf0]  ;;  %v2136_v16 = vor.u32 %v3161_v8, %v2135_v7  ;;  %1257 = vmatpush.bf16.msra.mxu2 %v2408_v6  ;;  %v2201_v6 = vld [vmem:[%s5136_s1 + $0xb0] sm:$0xf0]  ;;  %v3755_v7 = vpack.c.bf16 %v23_v58, %v23_v58  ;;  %v2348_v8 = vor.u32 %v3211_v61, %v2345_v62 }
  0x1b   :  { %v2391_v12 = vld [vmem:[%s5136_s1 + $0x220] sm:$0xf]  ;;  %v3225_v13 = vld [vmem:[%s5136_s1 + $0x22c] sm:$0xf0]  ;;  %v2264_v20 = vor.u32 %v3193_v11, %v2263_v9  ;;  %1270 = vmatpush.bf16.msra.mxu3 %v2536_v10  ;;  %v3207_v10 = vld [vmem:[%s5136_s1 + $0x1a4] sm:$0xf] }
  0x1c   :  { %v2519_v14 = vld [vmem:[%s5136_s1 + $0x320] sm:$0xf]  ;;  %v3257_v15 = vld [vmem:[%s5136_s1 + $0x32c] sm:$0xf0]  ;;  %v2392_v21 = vor.u32 %v3225_v13, %v2391_v12  ;;  %1232 = vmatpush.bf16.msra.mxu0 %v2136_v16  ;;  %v2329_v11 = vld [vmem:[%s5136_s1 + $0x1b0] sm:$0xf0]  ;;  %v2204_v13 = vor.u32 %v3175_v5, %v2201_v6 }
  0x1d   :  { %v2119_v17 = vld [vmem:[%s5136_s1] sm:$0xf]  ;;  %v3157_v18 = vld [vmem:[%s5136_s1 + $0xc] sm:$0xf0]  ;;  %v2520_v25 = vor.u32 %v3257_v15, %v2519_v14  ;;  %1245 = vmatpush.bf16.msra.mxu1 %v2264_v20  ;;  %v2332_v20 = vor.u32 %v3207_v10, %v2329_v11  ;;  %v3163_v43 = vld [vmem:[%s5136_s1 + $0x44] sm:$0xf] }
  0x1e   :  { %v2247_v19 = vld [vmem:[%s5136_s1 + $0x100] sm:$0xf]  ;;  %v3189_v22 = vld [vmem:[%s5136_s1 + $0x10c] sm:$0xf0]  ;;  %v2120_v32 = vor.u32 %v3157_v18, %v2119_v17  ;;  %1258 = vmatpush.bf16.msra.mxu2 %v2392_v21  ;;  %v3171_v18 = vld [vmem:[%s5136_s1 + $0x84] sm:$0xf] }
  0x1f   :  { %v2375_v23 = vld [vmem:[%s5136_s1 + $0x200] sm:$0xf]  ;;  %v3221_v24 = vld [vmem:[%s5136_s1 + $0x20c] sm:$0xf0]  ;;  %v2248_v36 = vor.u32 %v3189_v22, %v2247_v19  ;;  %1271 = vmatpush.bf16.msra.mxu3 %v2520_v25  ;;  %v2185_v19 = vld [vmem:[%s5136_s1 + $0x90] sm:$0xf0] }
  0x20   :  { %v2503_v26 = vld [vmem:[%s5136_s1 + $0x300] sm:$0xf]  ;;  %v3253_v27 = vld [vmem:[%s5136_s1 + $0x30c] sm:$0xf0]  ;;  %v2376_v37 = vor.u32 %v3221_v24, %v2375_v23  ;;  %1233 = vmatpush.bf16.msra.mxu0 %v2120_v32  ;;  %v3203_v22 = vld [vmem:[%s5136_s1 + $0x184] sm:$0xf]  ;;  %v2188_v25 = vor.u32 %v3171_v18, %v2185_v19 }
  0x21   :  { %v2743_v28 = vld [vmem:[%s5136_s1 + $0x4e0] sm:$0xf]  ;;  %v3313_v29 = vld [vmem:[%s5136_s1 + $0x4ec] sm:$0xf0]  ;;  %v2504_v41 = vor.u32 %v3253_v27, %v2503_v26  ;;  %1246 = vmatpush.bf16.msra.mxu1 %v2248_v36  ;;  %v2313_v23 = vld [vmem:[%s5136_s1 + $0x190] sm:$0xf0] }
  0x22   :  { %v2871_v30 = vld [vmem:[%s5136_s1 + $0x5e0] sm:$0xf]  ;;  %v3345_v31 = vld [vmem:[%s5136_s1 + $0x5ec] sm:$0xf0]  ;;  %v2744_v42 = vor.u32 %v3313_v29, %v2743_v28  ;;  %1259 = vmatpush.bf16.msra.mxu2 %v2376_v37  ;;  %v2316_v33 = vor.u32 %v3203_v22, %v2313_v23  ;;  %v2297_v36 = vld [vmem:[%s5136_s1 + $0x170] sm:$0xf0] }
  0x23   :  { %v24_v35 = vld [vmem:[%s5135_s0 + $0x10] sm:$0xff]  ;;  %v2887_v38 = vld [vmem:[%s5136_s1 + $0x600] sm:$0xf]  ;;  %v2872_v46 = vor.u32 %v3345_v31, %v2871_v30  ;;  %1272 = vmatpush.bf16.msra.mxu3 %v2504_v41  ;;  %v3167_v30 = vld [vmem:[%s5136_s1 + $0x64] sm:$0xf] }
  0x24   :  { %v3349_v39 = vld [vmem:[%s5136_s1 + $0x60c] sm:$0xf0]  ;;  %v22_v40 = vld [vmem:[%s5135_s0] sm:$0xff]  ;;  %v3711_v51 = vpack.c.bf16 %v24_v35, %v24_v35  ;;  %1278 = vmatpush.bf16.msrb.mxu0 %v2744_v42  ;;  %1247 = vmatmul.bf16.vlgmr.msra.gmra.mxu1 %v3755_v7  ;;  %v2169_v31 = vld [vmem:[%s5136_s1 + $0x70] sm:$0xf0] }
  0x25   :  { %v2727_v48 = vld [vmem:[%s5136_s1 + $0x4c0] sm:$0xf]  ;;  %v3309_v49 = vld [vmem:[%s5136_s1 + $0x4cc] sm:$0xf0]  ;;  %v3722_v55 = vpack.c.bf16 %v22_v40, %v22_v40  ;;  %v2888_v56 = vor.u32 %v3349_v39, %v2887_v38  ;;  %1291 = vmatpush.bf16.msrb.mxu1 %v2872_v46  ;;  %v3199_v35 = vld [vmem:[%s5136_s1 + $0x164] sm:$0xf]  ;;  %v2172_v38 = vor.u32 %v3167_v30, %v2169_v31 }
  0x26   :  { %v2855_v50 = vld [vmem:[%s5136_s1 + $0x5c0] sm:$0xf]  ;;  %v3341_v52 = vld [vmem:[%s5136_s1 + $0x5cc] sm:$0xf0]  ;;  %v2728_v60 = vor.u32 %v3309_v49, %v2727_v48  ;;  %1260 = vmatmul.bf16.vlgmr.msra.gmra.mxu2 %v3711_v51  ;;  %1273 = vmatmul.bf16.vlgmr.msra.gmra.mxu3 %v3724_v57  ;;  %v2153_v44 = vld [vmem:[%s5136_s1 + $0x50] sm:$0xf0]  ;;  %v2300_v46 = vor.u32 %v3199_v35, %v2297_v36 }
  0x27   :  { %1317 = vmatpush.bf16.msrb.mxu3 %v2236_v47  ;;  %v2856_v63 = vor.u32 %v3341_v52, %v2855_v50  ;;  %v2711_v1 = vld [vmem:[%s5136_s1 + $0x4a0] sm:$0xf]  ;;  %v3305_v2 = vld [vmem:[%s5136_s1 + $0x4ac] sm:$0xf0]  ;;  %1234 = vmatmul.bf16.vlgmr.msra.gmra.mxu0 %v3722_v55  ;;  %v3195_v48 = vld [vmem:[%s5136_s1 + $0x144] sm:$0xf]  ;;  %v2156_v52 = vor.u32 %v3163_v43, %v2153_v44 }
  0x28   :  { %v2839_v3 = vld [vmem:[%s5136_s1 + $0x5a0] sm:$0xf]  ;;  %v3337_v4 = vld [vmem:[%s5136_s1 + $0x5ac] sm:$0xf0]  ;;  %1311 = vmatpush.bf16.msrb.mxu2 %v2888_v56  ;;  %1279 = vmatpush.bf16.msrb.mxu0 %v2728_v60  ;;  %v2712_v9 = vor.u32 %v3305_v2, %v2711_v1  ;;  %v2281_v49 = vld [vmem:[%s5136_s1 + $0x150] sm:$0xf0] }
  0x29   :  { %1292 = vmatpush.bf16.msrb.mxu1 %v2856_v63  ;;  %v2840_v12 = vor.u32 %v3337_v4, %v2839_v3  ;;  %v2695_v14 = vld [vmem:[%s5136_s1 + $0x480] sm:$0xf]  ;;  %v3301_v15 = vld [vmem:[%s5136_s1 + $0x48c] sm:$0xf0]  ;;  %v2137_v60 = vld [vmem:[%s5136_s1 + $0x30] sm:$0xf0]  ;;  %v2284_v61 = vor.u32 %v3195_v48, %v2281_v49 }
  0x2a   :  { %v2823_v16 = vld [vmem:[%s5136_s1 + $0x580] sm:$0xf]  ;;  %v3333_v17 = vld [vmem:[%s5136_s1 + $0x58c] sm:$0xf0]  ;;  %v2696_v21 = vor.u32 %v3301_v15, %v2695_v14  ;;  %v3191_v63 = vld [vmem:[%s5136_s1 + $0x124] sm:$0xf] }
  0x2b   :  { %1318 = vmatpush.bf16.msrb.mxu3 %v2220_v0  ;;  %v2824_v24 = vor.u32 %v3333_v17, %v2823_v16  ;;  %v2679_v26 = vld [vmem:[%s5136_s1 + $0x460] sm:$0xf]  ;;  %v3297_v27 = vld [vmem:[%s5136_s1 + $0x46c] sm:$0xf0]  ;;  %v2265_v0 = vld [vmem:[%s5136_s1 + $0x130] sm:$0xf0] }
  0x2c   :  { %1330 = vmatpush.bf16.msra.mxu2 %v2364_v59  ;;  %1280 = vmatpush.bf16.msrb.mxu0 %v2712_v9  ;;  %v2807_v28 = vld [vmem:[%s5136_s1 + $0x560] sm:$0xf]  ;;  %v3329_v29 = vld [vmem:[%s5136_s1 + $0x56c] sm:$0xf0]  ;;  %v2680_v34 = vor.u32 %v3297_v27, %v2679_v26  ;;  %v3159_v59 = vld [vmem:[%s5136_s1 + $0x24] sm:$0xf]  ;;  %v2268_v14 = vor.u32 %v3191_v63, %v2265_v0 }
  0x2d   :  { %1293 = vmatpush.bf16.msrb.mxu1 %v2840_v12  ;;  %v28_v32 = vld [vmem:[%s5135_s0 + $0x30] sm:$0xff]  ;;  %v2808_v37 = vor.u32 %v3329_v29, %v2807_v28  ;;  %v2663_v39 = vld [vmem:[%s5136_s1 + $0x440] sm:$0xf]  ;;  %v2140_v3 = vor.u32 %v3159_v59, %v2137_v60  ;;  %v3247_v10 = vld [vmem:[%s5136_s1 + $0x2e4] sm:$0xf] }
  0x2e   :  { %v3293_v40 = vld [vmem:[%s5136_s1 + $0x44c] sm:$0xf0]  ;;  %v2791_v41 = vld [vmem:[%s5136_s1 + $0x540] sm:$0xf]  ;;  %v3834_v45 = vpack.c.bf16 %v28_v32, %v28_v32  ;;  %v2121_v9 = vld [vmem:[%s5136_s1 + $0x10] sm:$0xf0] }
  0x2f   :  { %1319 = vmatpush.bf16.msrb.mxu3 %v2204_v13  ;;  %v3325_v42 = vld [vmem:[%s5136_s1 + $0x54c] sm:$0xf0]  ;;  %v2664_v47 = vor.u32 %v3293_v40, %v2663_v39  ;;  %v2647_v53 = vld [vmem:[%s5136_s1 + $0x420] sm:$0xf]  ;;  %v2489_v11 = vld [vmem:[%s5136_s1 + $0x2f0] sm:$0xf0] }
  0x30   :  { %1331 = vmatpush.bf16.msra.mxu2 %v2348_v8  ;;  %1281 = vmatpush.bf16.msrb.mxu0 %v2696_v21  ;;  %v2792_v50 = vor.u32 %v3325_v42, %v2791_v41  ;;  %v3289_v54 = vld [vmem:[%s5136_s1 + $0x42c] sm:$0xf0]  ;;  %v2775_v56 = vld [vmem:[%s5136_s1 + $0x520] sm:$0xf]  ;;  %v3155_v8 = vld [vmem:[%s5136_s1 + $0x4] sm:$0xf] }
  0x31   :  { %1294 = vmatpush.bf16.msrb.mxu1 %v2824_v24  ;;  %v3321_v58 = vld [vmem:[%s5136_s1 + $0x52c] sm:$0xf0]  ;;  %v2648_v62 = vor.u32 %v3289_v54, %v2647_v53  ;;  %v2631_v1 = vld [vmem:[%s5136_s1 + $0x400] sm:$0xf]  ;;  %v3279_v12 = vld [vmem:[%s5136_s1 + $0x3e4] sm:$0xf]  ;;  %v2492_v24 = vor.u32 %v3247_v10, %v2489_v11 }
  0x32   :  { %v2776_v2 = vor.u32 %v3321_v58, %v2775_v56  ;;  %v3285_v4 = vld [vmem:[%s5136_s1 + $0x40c] sm:$0xf0]  ;;  %v2759_v5 = vld [vmem:[%s5136_s1 + $0x500] sm:$0xf]  ;;  %v2617_v13 = vld [vmem:[%s5136_s1 + $0x3f0] sm:$0xf0] }
  0x33   :  { %1320 = vmatpush.bf16.msrb.mxu3 %v2188_v25  ;;  %v3317_v6 = vld [vmem:[%s5136_s1 + $0x50c] sm:$0xf0]  ;;  %v2632_v15 = vor.u32 %v3285_v4, %v2631_v1  ;;  %v3311_v16 = vld [vmem:[%s5136_s1 + $0x4e4] sm:$0xf]  ;;  %v2745_v17 = vld [vmem:[%s5136_s1 + $0x4f0] sm:$0xf0]  ;;  %v2620_v25 = vor.u32 %v3279_v12, %v2617_v13 }
  0x34   :  { %1332 = vmatpush.bf16.msra.mxu2 %v2332_v20  ;;  %1282 = vmatpush.bf16.msrb.mxu0 %v2680_v34  ;;  %v26_v18 = vld [vmem:[%s5135_s0 + $0x20] sm:$0xff]  ;;  %v2760_v19 = vor.u32 %v3317_v6, %v2759_v5  ;;  %v2124_v20 = vor.u32 %v3155_v8, %v2121_v9  ;;  %v2249_v22 = vld [vmem:[%s5136_s1 + $0x110] sm:$0xf0]  ;;  %v27_v23 = vld [vmem:[%s5135_s0 + $0x28] sm:$0xff]  ;;  %v2748_v29 = vor.u32 %v3311_v16, %v2745_v17 }
  0x35   :  { %1295 = vmatpush.bf16.msrb.mxu1 %v2808_v37  ;;  %v3187_v21 = vld [vmem:[%s5136_s1 + $0x104] sm:$0xf]  ;;  %v2873_v27 = vld [vmem:[%s5136_s1 + $0x5f0] sm:$0xf0]  ;;  %v3925_v30 = vpack.c.bf16 %v26_v18, %v26_v18  ;;  %v3936_v35 = vpack.c.bf16 %v27_v23, %v27_v23 }
  0x36   :  { %2901 = vmatmul.msk.bf16.vlgmr.msrb.gmra.mxu2 %vm1222_vm0, %v3834_v45  ;;  %v3343_v26 = vld [vmem:[%s5136_s1 + $0x5e4] sm:$0xf]  ;;  %v2473_v31 = vld [vmem:[%s5136_s1 + $0x2d0] sm:$0xf0]  ;;  %v2252_v34 = vor.u32 %v3187_v21, %v2249_v22 }
  0x37   :  { %1321 = vmatpush.bf16.msrb.mxu3 %v2172_v38  ;;  %v3243_v28 = vld [vmem:[%s5136_s1 + $0x2c4] sm:$0xf]  ;;  %v2729_v37 = vld [vmem:[%s5136_s1 + $0x4d0] sm:$0xf0]  ;;  %v2876_v38 = vor.u32 %v3343_v26, %v2873_v27 }
  0x38   :  { %1333 = vmatpush.bf16.msra.mxu2 %v2316_v33  ;;  %1283 = vmatpush.bf16.msrb.mxu0 %v2664_v47  ;;  %v3275_v32 = vld [vmem:[%s5136_s1 + $0x3c4] sm:$0xf]  ;;  %v2601_v33 = vld [vmem:[%s5136_s1 + $0x3d0] sm:$0xf0]  ;;  %v2476_v39 = vor.u32 %v3243_v28, %v2473_v31 }
  0x39   :  { %1296 = vmatpush.bf16.msrb.mxu1 %v2792_v50  ;;  %v3307_v36 = vld [vmem:[%s5136_s1 + $0x4c4] sm:$0xf]  ;;  %v2604_v40 = vor.u32 %v3275_v32, %v2601_v33  ;;  %v2857_v42 = vld [vmem:[%s5136_s1 + $0x5d0] sm:$0xf0] }
  0x3a   :  { %v3339_v41 = vld [vmem:[%s5136_s1 + $0x5c4] sm:$0xf]  ;;  %v2732_v44 = vor.u32 %v3307_v36, %v2729_v37  ;;  %v2585_v48 = vld [vmem:[%s5136_s1 + $0x3b0] sm:$0xf0] }
  0x3b   :  { %1322 = vmatpush.bf16.msrb.mxu3 %v2156_v52  ;;  %v3239_v43 = vld [vmem:[%s5136_s1 + $0x2a4] sm:$0xf]  ;;  %v2713_v50 = vld [vmem:[%s5136_s1 + $0x4b0] sm:$0xf0]  ;;  %v2860_v52 = vor.u32 %v3339_v41, %v2857_v42 }
  0x3c   :  { %1334 = vmatpush.bf16.msra.mxu2 %v2300_v46  ;;  %1284 = vmatpush.bf16.msrb.mxu0 %v2648_v62  ;;  %v2457_v46 = vld [vmem:[%s5136_s1 + $0x2b0] sm:$0xf0]  ;;  %v3271_v47 = vld [vmem:[%s5136_s1 + $0x3a4] sm:$0xf] }
  0x3d   :  { %1297 = vmatpush.bf16.msrb.mxu1 %v2776_v2  ;;  %v3303_v49 = vld [vmem:[%s5136_s1 + $0x4a4] sm:$0xf]  ;;  %v2460_v53 = vor.u32 %v3239_v43, %v2457_v46  ;;  %v2588_v54 = vor.u32 %v3271_v47, %v2585_v48  ;;  %v2841_v58 = vld [vmem:[%s5136_s1 + $0x5b0] sm:$0xf0] }
  0x3e   :  { %v3335_v56 = vld [vmem:[%s5136_s1 + $0x5a4] sm:$0xf]  ;;  %v2716_v60 = vor.u32 %v3303_v49, %v2713_v50  ;;  %v2569_v63 = vld [vmem:[%s5136_s1 + $0x390] sm:$0xf0] }
  0x3f   :  { %1323 = vmatpush.bf16.msrb.mxu3 %v2140_v3  ;;  %v3235_v59 = vld [vmem:[%s5136_s1 + $0x284] sm:$0xf]  ;;  %v2697_v1 = vld [vmem:[%s5136_s1 + $0x490] sm:$0xf0]  ;;  %v2844_v2 = vor.u32 %v3335_v56, %v2841_v58 }
  0x40   :  { %1335 = vmatpush.bf16.msra.mxu2 %v2284_v61  ;;  %1285 = vmatpush.bf16.msrb.mxu0 %v2632_v15  ;;  %v2441_v61 = vld [vmem:[%s5136_s1 + $0x290] sm:$0xf0]  ;;  %v3267_v62 = vld [vmem:[%s5136_s1 + $0x384] sm:$0xf] }
  0x41   :  { %1298 = vmatpush.bf16.msrb.mxu1 %v2760_v19  ;;  %v3299_v0 = vld [vmem:[%s5136_s1 + $0x484] sm:$0xf]  ;;  %v2444_v3 = vor.u32 %v3235_v59, %v2441_v61  ;;  %v2572_v4 = vor.u32 %v3267_v62, %v2569_v63  ;;  %v2825_v6 = vld [vmem:[%s5136_s1 + $0x590] sm:$0xf0] }
  0x42   :  { %v3331_v5 = vld [vmem:[%s5136_s1 + $0x584] sm:$0xf]  ;;  %v2700_v9 = vor.u32 %v3299_v0, %v2697_v1  ;;  %v2425_v10 = vld [vmem:[%s5136_s1 + $0x270] sm:$0xf0] }
  0x43   :  { %1324 = vmatpush.bf16.msrb.mxu3 %v2124_v20  ;;  %1286 = vmatmul.bf16.vlgmr.msrb.gmra.mxu0 %v3925_v30  ;;  %v3231_v8 = vld [vmem:[%s5136_s1 + $0x264] sm:$0xf]  ;;  %v2553_v12 = vld [vmem:[%s5136_s1 + $0x370] sm:$0xf0]  ;;  %v2828_v15 = vor.u32 %v3331_v5, %v2825_v6 }
  0x44   :  { %1336 = vmatpush.bf16.msra.mxu2 %v2268_v14  ;;  %1343 = vmatpush.bf16.msra.mxu0 %v2492_v24  ;;  %v3263_v11 = vld [vmem:[%s5136_s1 + $0x364] sm:$0xf]  ;;  %v2681_v14 = vld [vmem:[%s5136_s1 + $0x470] sm:$0xf0]  ;;  %v2428_v16 = vor.u32 %v3231_v8, %v2425_v10 }
  0x45   :  { %1356 = vmatpush.bf16.msra.mxu1 %v2620_v25  ;;  %v3295_v13 = vld [vmem:[%s5136_s1 + $0x464] sm:$0xf]  ;;  %v2556_v17 = vor.u32 %v3263_v11, %v2553_v12  ;;  %v2809_v19 = vld [vmem:[%s5136_s1 + $0x570] sm:$0xf0] }
  0x46   :  { %1299 = vmatmul.bf16.vlgmr.msrb.gmra.mxu1 %v3936_v35  ;;  %1325 = vmatmul.bf16.vlgmr.msrb.gmra.mxu3 %v3722_v55  ;;  %v3327_v18 = vld [vmem:[%s5136_s1 + $0x564] sm:$0xf]  ;;  %v2684_v21 = vor.u32 %v3295_v13, %v2681_v14  ;;  %v2409_v22 = vld [vmem:[%s5136_s1 + $0x250] sm:$0xf0] }
  0x47   :  { %1369 = vmatpush.bf16.msra.mxu3 %v2748_v29  ;;  %v3227_v20 = vld [vmem:[%s5136_s1 + $0x244] sm:$0xf]  ;;  %v2537_v24 = vld [vmem:[%s5136_s1 + $0x350] sm:$0xf0]  ;;  %v2812_v27 = vor.u32 %v3327_v18, %v2809_v19 }
  0x48   :  { %1337 = vmatpush.bf16.msra.mxu2 %v2252_v34  ;;  %1344 = vmatpush.bf16.msra.mxu0 %v2476_v39  ;;  %v3259_v23 = vld [vmem:[%s5136_s1 + $0x344] sm:$0xf]  ;;  %v2665_v26 = vld [vmem:[%s5136_s1 + $0x450] sm:$0xf0]  ;;  %v2412_v28 = vor.u32 %v3227_v20, %v2409_v22 }
  0x49   :  { %1357 = vmatpush.bf16.msra.mxu1 %v2604_v40  ;;  %v3291_v25 = vld [vmem:[%s5136_s1 + $0x444] sm:$0xf]  ;;  %v2540_v29 = vor.u32 %v3259_v23, %v2537_v24  ;;  %v2793_v32 = vld [vmem:[%s5136_s1 + $0x550] sm:$0xf0] }
  0x4a   :  { %v3323_v31 = vld [vmem:[%s5136_s1 + $0x544] sm:$0xf]  ;;  %v2668_v34 = vor.u32 %v3291_v25, %v2665_v26  ;;  %v2393_v36 = vld [vmem:[%s5136_s1 + $0x230] sm:$0xf0] }
  0x4b   :  { %1370 = vmatpush.bf16.msra.mxu3 %v2732_v44  ;;  %1338 = vmatmul.bf16.vlgmr.msra.gmra.mxu2 %v3755_v7  ;;  %v3223_v33 = vld [vmem:[%s5136_s1 + $0x224] sm:$0xf]  ;;  %v2649_v40 = vld [vmem:[%s5136_s1 + $0x430] sm:$0xf0]  ;;  %v2796_v41 = vor.u32 %v3323_v31, %v2793_v32 }
  0x4c   :  { %1382 = vmatpush.bf16.msrb.mxu2 %v2876_v38  ;;  %1345 = vmatpush.bf16.msra.mxu0 %v2460_v53  ;;  %v3255_v37 = vld [vmem:[%s5136_s1 + $0x324] sm:$0xf]  ;;  %v2521_v38 = vld [vmem:[%s5136_s1 + $0x330] sm:$0xf0]  ;;  %v2396_v46 = vor.u32 %v3223_v33, %v2393_v36 }
  0x4d   :  { %1358 = vmatpush.bf16.msra.mxu1 %v2588_v54  ;;  %v3287_v39 = vld [vmem:[%s5136_s1 + $0x424] sm:$0xf]  ;;  %v2777_v43 = vld [vmem:[%s5136_s1 + $0x530] sm:$0xf0]  ;;  %v2524_v47 = vor.u32 %v3255_v37, %v2521_v38 }
  0x4e   :  { %v3319_v42 = vld [vmem:[%s5136_s1 + $0x524] sm:$0xf]  ;;  %v2377_v48 = vld [vmem:[%s5136_s1 + $0x210] sm:$0xf0] }
  0x4f   :  { %1371 = vmatpush.bf16.msra.mxu3 %v2716_v60  ;;  %v3219_v44 = vld [vmem:[%s5136_s1 + $0x204] sm:$0xf]  ;;  %v2505_v50 = vld [vmem:[%s5136_s1 + $0x310] sm:$0xf0] }
  0x50   :  { %1383 = vmatpush.bf16.msrb.mxu2 %v2860_v52  ;;  %1346 = vmatpush.bf16.msra.mxu0 %v2444_v3  ;;  %v3251_v49 = vld [vmem:[%s5136_s1 + $0x304] sm:$0xf]  ;;  %v2652_v52 = vor.u32 %v3287_v39, %v2649_v40  ;;  %v2633_v54 = vld [vmem:[%s5136_s1 + $0x410] sm:$0xf0] }
  0x51   :  { %1359 = vmatpush.bf16.msra.mxu1 %v2572_v4  ;;  %v3283_v53 = vld [vmem:[%s5136_s1 + $0x404] sm:$0xf] }
  0x53   :  { %1372 = vmatpush.bf16.msra.mxu3 %v2700_v9 }
  0x54   :  { %1384 = vmatpush.bf16.msrb.mxu2 %v2844_v2  ;;  %1347 = vmatpush.bf16.msra.mxu0 %v2428_v16 }
  0x55   :  { %1360 = vmatpush.bf16.msra.mxu1 %v2556_v17 }
  0x57   :  { %1373 = vmatpush.bf16.msra.mxu3 %v2684_v21 }
  0x58   :  { %1385 = vmatpush.bf16.msrb.mxu2 %v2828_v15  ;;  %1348 = vmatpush.bf16.msra.mxu0 %v2412_v28 }
  0x59   :  { %1361 = vmatpush.bf16.msra.mxu1 %v2540_v29 }
  0x5b   :  { %1374 = vmatpush.bf16.msra.mxu3 %v2668_v34 }
  0x5c   :  { %1386 = vmatpush.bf16.msrb.mxu2 %v2812_v27 }
  0x5d   :  { %10 = vsyncpa [#allocation3], 0  ;;  %v2239_v56 = vld [vmem:[%s5136_s1 + $0xe8] sm:$0xf]  ;;  %v3186_v58 = vld [vmem:[%s5136_s1 + $0xf4] sm:$0xf0]  ;;  %v2780_v60 = vor.u32 %v3319_v42, %v2777_v43  ;;  %1349 = vmatpush.bf16.msra.mxu0 %v2396_v46  ;;  %1362 = vmatpush.bf16.msra.mxu1 %v2524_v47  ;;  %v2380_v0 = vor.u32 %v3219_v44, %v2377_v48  ;;  %v2508_v1 = vor.u32 %v3251_v49, %v2505_v50 }
  0x5e   :  { %v3347_v59 = vld [vmem:[%s5136_s1 + $0x604] sm:$0xf]  ;;  %v2889_v61 = vld [vmem:[%s5136_s1 + $0x610] sm:$0xf0]  ;;  %v2495_v62 = vld [vmem:[%s5136_s1 + $0x2e8] sm:$0xf]  ;;  %v2636_v4 = vor.u32 %v3283_v53, %v2633_v54  ;;  %v2240_v5 = vor.u32 %v3186_v58, %v2239_v56 }
  0x5f   :  { %v3250_v63 = vld [vmem:[%s5136_s1 + $0x2f4] sm:$0xf0]  ;;  %v3315_v2 = vld [vmem:[%s5136_s1 + $0x504] sm:$0xf]  ;;  %v2761_v3 = vld [vmem:[%s5136_s1 + $0x510] sm:$0xf0]  ;;  %1375 = vmatpush.bf16.msra.mxu3 %v2652_v52  ;;  %v2892_v9 = vor.u32 %v3347_v59, %v2889_v61 }
  0x60   :  { %1387 = vmatpush.bf16.msrb.mxu2 %v2796_v41  ;;  %v2623_v6 = vld [vmem:[%s5136_s1 + $0x3e8] sm:$0xf]  ;;  %v3282_v8 = vld [vmem:[%s5136_s1 + $0x3f4] sm:$0xf0]  ;;  %v2496_v12 = vor.u32 %v3250_v63, %v2495_v62  ;;  %v2764_v13 = vor.u32 %v3315_v2, %v2761_v3  ;;  %vm1986_vm1 = vcmask 1041408   ;;  %vm1982_vm2 = vcmask 949248  }
  0x61   :  { %v2367_v10 = vld [vmem:[%s5136_s1 + $0x1e8] sm:$0xf]  ;;  %v3218_v11 = vld [vmem:[%s5136_s1 + $0x1f4] sm:$0xf0]  ;;  %1350 = vmatpush.bf16.msra.mxu0 %v2380_v0  ;;  %1363 = vmatpush.bf16.msra.mxu1 %v2508_v1  ;;  %v2624_v16 = vor.u32 %v3282_v8, %v2623_v6  ;;  %s2108_s24 = sshll.u32 %s5140_s5, 4  ;;  %s2109_s24 = int_to_ptr.hbm [resolvable:$true] %s2108_s24 }
  0x62   :  { %v2223_v14 = vld [vmem:[%s5136_s1 + $0xc8] sm:$0xf]  ;;  %v3182_v15 = vld [vmem:[%s5136_s1 + $0xd4] sm:$0xf0]  ;;  %v2368_v19 = vor.u32 %v3218_v11, %v2367_v10 }
  0x63   :  { %v2479_v17 = vld [vmem:[%s5136_s1 + $0x2c8] sm:$0xf]  ;;  %v3246_v18 = vld [vmem:[%s5136_s1 + $0x2d4] sm:$0xf0]  ;;  %1376 = vmatpush.bf16.msra.mxu3 %v2636_v4  ;;  %v2224_v22 = vor.u32 %v3182_v15, %v2223_v14 }
  0x64   :  { %1388 = vmatpush.bf16.msrb.mxu2 %v2780_v60  ;;  %v2607_v20 = vld [vmem:[%s5136_s1 + $0x3c8] sm:$0xf]  ;;  %v3278_v21 = vld [vmem:[%s5136_s1 + $0x3d4] sm:$0xf0]  ;;  %1351 = vmatmul.bf16.vlgmr.msra.gmra.mxu0 %v3711_v51  ;;  %v2480_v25 = vor.u32 %v3246_v18, %v2479_v17 }
  0x65   :  { %1408 = vmatpush.bf16.msrb.mxu1 %v2240_v5  ;;  %1434 = vmatpush.bf16.msrb.mxu0 %v2496_v12  ;;  %v2351_v23 = vld [vmem:[%s5136_s1 + $0x1c8] sm:$0xf]  ;;  %v3214_v24 = vld [vmem:[%s5136_s1 + $0x1d4] sm:$0xf0]  ;;  %v2608_v28 = vor.u32 %v3278_v21, %v2607_v20 }
  0x66   :  { %v2207_v26 = vld [vmem:[%s5136_s1 + $0xa8] sm:$0xf]  ;;  %v3178_v27 = vld [vmem:[%s5136_s1 + $0xb4] sm:$0xf0]  ;;  %1377 = vmatmul.bf16.vlgmr.msra.gmra.mxu3 %v3925_v30  ;;  %1364 = vmatmul.bf16.vlgmr.msra.gmra.mxu1 %v3724_v57  ;;  %v2352_v32 = vor.u32 %v3214_v24, %v2351_v23 }
  0x67   :  { %1402 = vmatpush.bf16.msrb.mxu3 %v2892_v9  ;;  %v2463_v29 = vld [vmem:[%s5136_s1 + $0x2a8] sm:$0xf]  ;;  %v3242_v31 = vld [vmem:[%s5136_s1 + $0x2b4] sm:$0xf0]  ;;  %v2208_v36 = vor.u32 %v3178_v27, %v2207_v26 }
  0x68   :  { %1389 = vmatpush.bf16.msrb.mxu2 %v2764_v13  ;;  %v2591_v33 = vld [vmem:[%s5136_s1 + $0x3a8] sm:$0xf]  ;;  %v3274_v34 = vld [vmem:[%s5136_s1 + $0x3b4] sm:$0xf0]  ;;  %v2464_v39 = vor.u32 %v3242_v31, %v2463_v29 }
  0x69   :  { %1409 = vmatpush.bf16.msrb.mxu1 %v2224_v22  ;;  %v2335_v37 = vld [vmem:[%s5136_s1 + $0x1a8] sm:$0xf]  ;;  %v3210_v38 = vld [vmem:[%s5136_s1 + $0x1b4] sm:$0xf0]  ;;  %1435 = vmatpush.bf16.msrb.mxu0 %v2480_v25  ;;  %v2592_v42 = vor.u32 %v3274_v34, %v2591_v33 }
  0x6a   :  { %v2191_v40 = vld [vmem:[%s5136_s1 + $0x88] sm:$0xf]  ;;  %v3174_v41 = vld [vmem:[%s5136_s1 + $0x94] sm:$0xf0]  ;;  %v2336_v46 = vor.u32 %v3210_v38, %v2335_v37 }
  0x6b   :  { %1421 = vmatpush.bf16.msra.mxu3 %v2368_v19  ;;  %1390 = vmatmul.bf16.vlgmr.msrb.gmra.mxu2 %v3936_v35  ;;  %v2447_v43 = vld [vmem:[%s5136_s1 + $0x288] sm:$0xf]  ;;  %v3238_v44 = vld [vmem:[%s5136_s1 + $0x294] sm:$0xf0]  ;;  %v2192_v49 = vor.u32 %v3174_v41, %v2191_v40 }
  0x6c   :  { %1447 = vmatpush.bf16.msra.mxu2 %v2624_v16  ;;  %v2575_v47 = vld [vmem:[%s5136_s1 + $0x388] sm:$0xf]  ;;  %v3270_v48 = vld [vmem:[%s5136_s1 + $0x394] sm:$0xf0]  ;;  %v2448_v53 = vor.u32 %v3238_v44, %v2447_v43 }
  0x6d   :  { %1410 = vmatpush.bf16.msrb.mxu1 %v2208_v36  ;;  %v2319_v50 = vld [vmem:[%s5136_s1 + $0x188] sm:$0xf]  ;;  %v3206_v52 = vld [vmem:[%s5136_s1 + $0x194] sm:$0xf0]  ;;  %1436 = vmatpush.bf16.msrb.mxu0 %v2464_v39  ;;  %v2576_v58 = vor.u32 %v3270_v48, %v2575_v47  ;;  %v3184_v47 = vld [vmem:[%s5136_s1 + $0xec] sm:$0xf] }
  0x6e   :  { %v2175_v54 = vld [vmem:[%s5136_s1 + $0x68] sm:$0xf]  ;;  %v3170_v56 = vld [vmem:[%s5136_s1 + $0x74] sm:$0xf0]  ;;  %v2320_v61 = vor.u32 %v3206_v52, %v2319_v50  ;;  %v2241_v48 = vld [vmem:[%s5136_s1 + $0xf8] sm:$0xf0] }
  0x6f   :  { %1422 = vmatpush.bf16.msra.mxu3 %v2352_v32  ;;  %v2431_v59 = vld [vmem:[%s5136_s1 + $0x268] sm:$0xf]  ;;  %v3234_v60 = vld [vmem:[%s5136_s1 + $0x274] sm:$0xf0]  ;;  %v2176_v0 = vor.u32 %v3170_v56, %v2175_v54 }
  0x70   :  { %1448 = vmatpush.bf16.msra.mxu2 %v2608_v28  ;;  %v2559_v62 = vld [vmem:[%s5136_s1 + $0x368] sm:$0xf]  ;;  %v3266_v63 = vld [vmem:[%s5136_s1 + $0x374] sm:$0xf0]  ;;  %v2432_v3 = vor.u32 %v3234_v60, %v2431_v59  ;;  %v3216_v60 = vld [vmem:[%s5136_s1 + $0x1ec] sm:$0xf] }
  0x71   :  { %1411 = vmatpush.bf16.msrb.mxu1 %v2192_v49  ;;  %v2303_v1 = vld [vmem:[%s5136_s1 + $0x168] sm:$0xf]  ;;  %v3202_v2 = vld [vmem:[%s5136_s1 + $0x174] sm:$0xf0]  ;;  %1437 = vmatpush.bf16.msrb.mxu0 %v2448_v53  ;;  %v2560_v6 = vor.u32 %v3266_v63, %v2559_v62  ;;  %v2244_v63 = vor.u32 %v3184_v47, %v2241_v48 }
  0x72   :  { %v2159_v4 = vld [vmem:[%s5136_s1 + $0x48] sm:$0xf]  ;;  %v3166_v5 = vld [vmem:[%s5136_s1 + $0x54] sm:$0xf0]  ;;  %v2304_v10 = vor.u32 %v3202_v2, %v2303_v1  ;;  %v3180_v1 = vld [vmem:[%s5136_s1 + $0xcc] sm:$0xf] }
  0x73   :  { %1423 = vmatpush.bf16.msra.mxu3 %v2336_v46  ;;  %v2415_v8 = vld [vmem:[%s5136_s1 + $0x248] sm:$0xf]  ;;  %v3230_v9 = vld [vmem:[%s5136_s1 + $0x254] sm:$0xf0]  ;;  %v2160_v13 = vor.u32 %v3166_v5, %v2159_v4  ;;  %v2225_v2 = vld [vmem:[%s5136_s1 + $0xd8] sm:$0xf0] }
  0x74   :  { %1449 = vmatpush.bf16.msra.mxu2 %v2592_v42  ;;  %v2543_v11 = vld [vmem:[%s5136_s1 + $0x348] sm:$0xf]  ;;  %v3262_v12 = vld [vmem:[%s5136_s1 + $0x354] sm:$0xf0]  ;;  %v2416_v16 = vor.u32 %v3230_v9, %v2415_v8 }
  0x75   :  { %1412 = vmatpush.bf16.msrb.mxu1 %v2176_v0  ;;  %v2287_v14 = vld [vmem:[%s5136_s1 + $0x148] sm:$0xf]  ;;  %v3198_v15 = vld [vmem:[%s5136_s1 + $0x154] sm:$0xf0]  ;;  %1438 = vmatpush.bf16.msrb.mxu0 %v2432_v3  ;;  %v2544_v19 = vor.u32 %v3262_v12, %v2543_v11  ;;  %v2353_v11 = vld [vmem:[%s5136_s1 + $0x1d8] sm:$0xf0]  ;;  %v2228_v12 = vor.u32 %v3180_v1, %v2225_v2 }
  0x76   :  { %v2143_v17 = vld [vmem:[%s5136_s1 + $0x28] sm:$0xf]  ;;  %v3162_v18 = vld [vmem:[%s5136_s1 + $0x34] sm:$0xf0]  ;;  %2902 = vmatmul.msk.bf16.vlgmr.msrb.gmra.mxu3 %vm1222_vm0, %v3834_v45  ;;  %v2288_v22 = vor.u32 %v3198_v15, %v2287_v14  ;;  %v3176_v14 = vld [vmem:[%s5136_s1 + $0xac] sm:$0xf] }
  0x77   :  { %1424 = vmatpush.bf16.msra.mxu3 %v2320_v61  ;;  %v2399_v20 = vld [vmem:[%s5136_s1 + $0x228] sm:$0xf]  ;;  %v3226_v21 = vld [vmem:[%s5136_s1 + $0x234] sm:$0xf0]  ;;  %v2144_v25 = vor.u32 %v3162_v18, %v2143_v17  ;;  %v2369_v61 = vld [vmem:[%s5136_s1 + $0x1f8] sm:$0xf0] }
  0x78   :  { %1450 = vmatpush.bf16.msra.mxu2 %v2576_v58  ;;  %v2527_v23 = vld [vmem:[%s5136_s1 + $0x328] sm:$0xf]  ;;  %v3258_v24 = vld [vmem:[%s5136_s1 + $0x334] sm:$0xf0]  ;;  %v2400_v29 = vor.u32 %v3226_v21, %v2399_v20  ;;  %v2372_v4 = vor.u32 %v3216_v60, %v2369_v61  ;;  %v2209_v15 = vld [vmem:[%s5136_s1 + $0xb8] sm:$0xf0] }
  0x79   :  { %1413 = vmatpush.bf16.msrb.mxu1 %v2160_v13  ;;  %v2271_v26 = vld [vmem:[%s5136_s1 + $0x128] sm:$0xf]  ;;  %v3194_v27 = vld [vmem:[%s5136_s1 + $0x134] sm:$0xf0]  ;;  %1439 = vmatpush.bf16.msrb.mxu0 %v2416_v16  ;;  %v2528_v34 = vor.u32 %v3258_v24, %v2527_v23  ;;  %v2337_v23 = vld [vmem:[%s5136_s1 + $0x1b8] sm:$0xf0]  ;;  %v2212_v24 = vor.u32 %v3176_v14, %v2209_v15 }
  0x7a   :  { %v2127_v28 = vld [vmem:[%s5136_s1 + $0x8] sm:$0xf]  ;;  %v3158_v31 = vld [vmem:[%s5136_s1 + $0x14] sm:$0xf0]  ;;  %v2272_v40 = vor.u32 %v3194_v27, %v2271_v26  ;;  %v3172_v26 = vld [vmem:[%s5136_s1 + $0x8c] sm:$0xf] }
  0x7b   :  { %1425 = vmatpush.bf16.msra.mxu3 %v2304_v10  ;;  %v2751_v32 = vld [vmem:[%s5136_s1 + $0x4e8] sm:$0xf]  ;;  %v3314_v33 = vld [vmem:[%s5136_s1 + $0x4f4] sm:$0xf0]  ;;  %v2128_v44 = vor.u32 %v3158_v31, %v2127_v28  ;;  %v3212_v10 = vld [vmem:[%s5136_s1 + $0x1cc] sm:$0xf] }
  0x7c   :  { %1451 = vmatpush.bf16.msra.mxu2 %v2560_v6  ;;  %v2255_v36 = vld [vmem:[%s5136_s1 + $0x108] sm:$0xf]  ;;  %v3222_v38 = vld [vmem:[%s5136_s1 + $0x214] sm:$0xf0]  ;;  %v2752_v49 = vor.u32 %v3314_v33, %v2751_v32  ;;  %v2356_v17 = vor.u32 %v3212_v10, %v2353_v11  ;;  %v2193_v27 = vld [vmem:[%s5136_s1 + $0x98] sm:$0xf0] }
  0x7d   :  { %v2383_v37 = vld [vmem:[%s5136_s1 + $0x208] sm:$0xf]  ;;  %v3254_v41 = vld [vmem:[%s5136_s1 + $0x314] sm:$0xf0]  ;;  %1414 = vmatpush.bf16.msrb.mxu1 %v2144_v25  ;;  %1440 = vmatpush.bf16.msrb.mxu0 %v2400_v29  ;;  %v2289_v1 = vld [vmem:[%s5136_s1 + $0x158] sm:$0xf0] }
  0x7e   :  { %v2511_v39 = vld [vmem:[%s5136_s1 + $0x308] sm:$0xf]  ;;  %v3350_v43 = vld [vmem:[%s5136_s1 + $0x614] sm:$0xf0]  ;;  %v2384_v50 = vor.u32 %v3222_v38, %v2383_v37  ;;  %v2321_v37 = vld [vmem:[%s5136_s1 + $0x198] sm:$0xf0]  ;;  %v2196_v38 = vor.u32 %v3172_v26, %v2193_v27 }
  0x7f   :  { %1426 = vmatpush.bf16.msra.mxu3 %v2288_v22  ;;  %v2895_v42 = vld [vmem:[%s5136_s1 + $0x608] sm:$0xf]  ;;  %v3190_v46 = vld [vmem:[%s5136_s1 + $0x114] sm:$0xf0]  ;;  %v2512_v56 = vor.u32 %v3254_v41, %v2511_v39  ;;  %v3208_v22 = vld [vmem:[%s5136_s1 + $0x1ac] sm:$0xf] }
  0x80   :  { %1452 = vmatpush.bf16.msra.mxu2 %v2544_v19  ;;  %v2879_v52 = vld [vmem:[%s5136_s1 + $0x5e8] sm:$0xf]  ;;  %v3346_v53 = vld [vmem:[%s5136_s1 + $0x5f4] sm:$0xf0]  ;;  %v2896_v59 = vor.u32 %v3350_v43, %v2895_v42  ;;  %v2256_v62 = vor.u32 %v3190_v46, %v2255_v36  ;;  %v2340_v29 = vor.u32 %v3208_v22, %v2337_v23  ;;  %v3204_v36 = vld [vmem:[%s5136_s1 + $0x18c] sm:$0xf] }
  0x81   :  { %v2735_v54 = vld [vmem:[%s5136_s1 + $0x4c8] sm:$0xf]  ;;  %v3310_v58 = vld [vmem:[%s5136_s1 + $0x4d4] sm:$0xf0]  ;;  %1415 = vmatpush.bf16.msrb.mxu1 %v2128_v44  ;;  %v2880_v0 = vor.u32 %v3346_v53, %v2879_v52  ;;  %1441 = vmatpush.bf16.msrb.mxu0 %v2384_v50  ;;  %v2177_v41 = vld [vmem:[%s5136_s1 + $0x78] sm:$0xf0]  ;;  %v2324_v43 = vor.u32 %v3204_v36, %v2321_v37 }
  0x82   :  { %v2736_v3 = vor.u32 %v3310_v58, %v2735_v54  ;;  %v2863_v5 = vld [vmem:[%s5136_s1 + $0x5c8] sm:$0xf]  ;;  %v3342_v6 = vld [vmem:[%s5136_s1 + $0x5d4] sm:$0xf0]  ;;  %v2305_v50 = vld [vmem:[%s5136_s1 + $0x178] sm:$0xf0] }
  0x83   :  { %1427 = vmatpush.bf16.msra.mxu3 %v2272_v40  ;;  %v2719_v8 = vld [vmem:[%s5136_s1 + $0x4a8] sm:$0xf]  ;;  %v3306_v9 = vld [vmem:[%s5136_s1 + $0x4b4] sm:$0xf0]  ;;  %v2864_v13 = vor.u32 %v3342_v6, %v2863_v5  ;;  %v3168_v40 = vld [vmem:[%s5136_s1 + $0x6c] sm:$0xf] }
  0x84   :  { %1453 = vmatpush.bf16.msra.mxu2 %v2528_v34  ;;  %1442 = vmatmul.bf16.vlgmr.msrb.gmra.mxu0 %v3711_v51  ;;  %v2720_v16 = vor.u32 %v3306_v9, %v2719_v8  ;;  %v2847_v18 = vld [vmem:[%s5136_s1 + $0x5a8] sm:$0xf]  ;;  %v3338_v19 = vld [vmem:[%s5136_s1 + $0x5b4] sm:$0xf0]  ;;  %v2180_v52 = vor.u32 %v3168_v40, %v2177_v41  ;;  %v3164_v54 = vld [vmem:[%s5136_s1 + $0x4c] sm:$0xf] }
  0x85   :  { %1460 = vmatpush.bf16.msra.mxu1 %v2752_v49  ;;  %1493 = vmatpush.bf16.msra.mxu0 %v2896_v59  ;;  %v2703_v20 = vld [vmem:[%s5136_s1 + $0x488] sm:$0xf]  ;;  %v3302_v21 = vld [vmem:[%s5136_s1 + $0x494] sm:$0xf0]  ;;  %v2848_v25 = vor.u32 %v3338_v19, %v2847_v18  ;;  %v3200_v49 = vld [vmem:[%s5136_s1 + $0x16c] sm:$0xf] }
  0x86   :  { %1416 = vmatmul.bf16.vlgmr.msrb.gmra.mxu1 %v3722_v55  ;;  %v2704_v28 = vor.u32 %v3302_v21, %v2703_v20  ;;  %v2831_v31 = vld [vmem:[%s5136_s1 + $0x588] sm:$0xf]  ;;  %v3334_v32 = vld [vmem:[%s5136_s1 + $0x594] sm:$0xf0]  ;;  %v2308_v59 = vor.u32 %v3200_v49, %v2305_v50  ;;  %v2145_v5 = vld [vmem:[%s5136_s1 + $0x38] sm:$0xf0] }
  0x87   :  { %1428 = vmatpush.bf16.msra.mxu3 %v2256_v62  ;;  %v2687_v33 = vld [vmem:[%s5136_s1 + $0x468] sm:$0xf]  ;;  %v3298_v34 = vld [vmem:[%s5136_s1 + $0x474] sm:$0xf0]  ;;  %v2832_v39 = vor.u32 %v3334_v32, %v2831_v31  ;;  %v2273_v14 = vld [vmem:[%s5136_s1 + $0x138] sm:$0xf0] }
  0x88   :  { %1454 = vmatpush.bf16.msra.mxu2 %v2512_v56  ;;  %v2688_v42 = vor.u32 %v3298_v34, %v2687_v33  ;;  %v2815_v44 = vld [vmem:[%s5136_s1 + $0x568] sm:$0xf]  ;;  %v3330_v46 = vld [vmem:[%s5136_s1 + $0x574] sm:$0xf0]  ;;  %v2161_v56 = vld [vmem:[%s5136_s1 + $0x58] sm:$0xf0] }
  0x89   :  { %1461 = vmatpush.bf16.msra.mxu1 %v2736_v3  ;;  %1512 = vmatpush.bf16.msrb.mxu0 %v2372_v4  ;;  %v2671_v47 = vld [vmem:[%s5136_s1 + $0x448] sm:$0xf]  ;;  %v3294_v48 = vld [vmem:[%s5136_s1 + $0x454] sm:$0xf0]  ;;  %v2816_v53 = vor.u32 %v3330_v46, %v2815_v44  ;;  %v2164_v2 = vor.u32 %v3164_v54, %v2161_v56  ;;  %v3160_v4 = vld [vmem:[%s5136_s1 + $0x2c] sm:$0xf] }
  0x8a   :  { %1429 = vmatmul.bf16.vlgmr.msra.gmra.mxu3 %v3755_v7  ;;  %v2672_v58 = vor.u32 %v3294_v48, %v2671_v47  ;;  %v2799_v60 = vld [vmem:[%s5136_s1 + $0x548] sm:$0xf]  ;;  %v3326_v61 = vld [vmem:[%s5136_s1 + $0x554] sm:$0xf0]  ;;  %v2148_v15 = vor.u32 %v3160_v4, %v2145_v5  ;;  %v3156_v20 = vld [vmem:[%s5136_s1 + $0xc] sm:$0xf] }
  0x8b   :  { %1473 = vmatpush.bf16.msrb.mxu3 %v2880_v0  ;;  %1455 = vmatmul.bf16.vlgmr.msra.gmra.mxu2 %v3724_v57  ;;  %v2655_v62 = vld [vmem:[%s5136_s1 + $0x428] sm:$0xf]  ;;  %v3196_v0 = vld [vmem:[%s5136_s1 + $0x14c] sm:$0xf]  ;;  %v2800_v3 = vor.u32 %v3326_v61, %v2799_v60  ;;  %v3322_v10 = vld [vmem:[%s5136_s1 + $0x534] sm:$0xf0] }
  0x8c   :  { %1499 = vmatpush.bf16.msrb.mxu2 %v2244_v63  ;;  %v3290_v63 = vld [vmem:[%s5136_s1 + $0x434] sm:$0xf0]  ;;  %v2292_v8 = vor.u32 %v3196_v0, %v2289_v1  ;;  %v2783_v9 = vld [vmem:[%s5136_s1 + $0x528] sm:$0xf]  ;;  %v2129_v21 = vld [vmem:[%s5136_s1 + $0x18] sm:$0xf0] }
  0x8d   :  { %1462 = vmatpush.bf16.msra.mxu1 %v2720_v16  ;;  %1513 = vmatpush.bf16.msrb.mxu0 %v2356_v17  ;;  %v2656_v6 = vor.u32 %v3290_v63, %v2655_v62  ;;  %v2639_v11 = vld [vmem:[%s5136_s1 + $0x408] sm:$0xf]  ;;  %v3248_v16 = vld [vmem:[%s5136_s1 + $0x2ec] sm:$0xf]  ;;  %v2497_v17 = vld [vmem:[%s5136_s1 + $0x2f8] sm:$0xf0]  ;;  %v2784_v18 = vor.u32 %v3322_v10, %v2783_v9  ;;  %v2132_v32 = vor.u32 %v3156_v20, %v2129_v21 }
  0x8e   :  { %v2767_v19 = vld [vmem:[%s5136_s1 + $0x508] sm:$0xf]  ;;  %v2625_v26 = vld [vmem:[%s5136_s1 + $0x3f8] sm:$0xf0]  ;;  %v2500_v27 = vor.u32 %v3248_v16, %v2497_v17  ;;  %v3244_v31 = vld [vmem:[%s5136_s1 + $0x2cc] sm:$0xf] }
  0x8f   :  { %1474 = vmatpush.bf16.msrb.mxu3 %v2864_v13  ;;  %v3192_v13 = vld [vmem:[%s5136_s1 + $0x12c] sm:$0xf]  ;;  %v2481_v33 = vld [vmem:[%s5136_s1 + $0x2d8] sm:$0xf0] }
  0x90   :  { %1500 = vmatpush.bf16.msrb.mxu2 %v2228_v12  ;;  %v3286_v12 = vld [vmem:[%s5136_s1 + $0x414] sm:$0xf0]  ;;  %v2276_v23 = vor.u32 %v3192_v13, %v2273_v14  ;;  %v3188_v34 = vld [vmem:[%s5136_s1 + $0x10c] sm:$0xf]  ;;  %v2257_v36 = vld [vmem:[%s5136_s1 + $0x118] sm:$0xf0] }
  0x91   :  { %1463 = vmatpush.bf16.msra.mxu1 %v2704_v28  ;;  %1514 = vmatpush.bf16.msrb.mxu0 %v2340_v29  ;;  %v2640_v22 = vor.u32 %v3286_v12, %v2639_v11  ;;  %v3312_v28 = vld [vmem:[%s5136_s1 + $0x4ec] sm:$0xf]  ;;  %v2753_v29 = vld [vmem:[%s5136_s1 + $0x4f8] sm:$0xf0]  ;;  %v2260_v44 = vor.u32 %v3188_v34, %v2257_v36 }
  0x92   :  { %v2756_v41 = vor.u32 %v3312_v28, %v2753_v29  ;;  %v2609_v46 = vld [vmem:[%s5136_s1 + $0x3d8] sm:$0xf0]  ;;  %v3308_v47 = vld [vmem:[%s5136_s1 + $0x4cc] sm:$0xf] }
  0x93   :  { %1475 = vmatpush.bf16.msrb.mxu3 %v2848_v25  ;;  %v3280_v25 = vld [vmem:[%s5136_s1 + $0x3ec] sm:$0xf]  ;;  %v2737_v48 = vld [vmem:[%s5136_s1 + $0x4d8] sm:$0xf0] }
  0x94   :  { %1501 = vmatpush.bf16.msrb.mxu2 %v2212_v24  ;;  %2903 = vmatmul.msk.bf16.vlgmr.msra.gmra.mxu0 %vm1222_vm0, %v3834_v45  ;;  %v3318_v24 = vld [vmem:[%s5136_s1 + $0x514] sm:$0xf0]  ;;  %v2628_v40 = vor.u32 %v3280_v25, %v2625_v26  ;;  %v3240_v50 = vld [vmem:[%s5136_s1 + $0x2ac] sm:$0xf]  ;;  %v2865_v54 = vld [vmem:[%s5136_s1 + $0x5d8] sm:$0xf0] }
  0x95   :  { %1464 = vmatpush.bf16.msra.mxu1 %v2688_v42  ;;  %1515 = vmatpush.bf16.msrb.mxu0 %v2324_v43  ;;  %v2768_v37 = vor.u32 %v3318_v24, %v2767_v19  ;;  %v3276_v42 = vld [vmem:[%s5136_s1 + $0x3cc] sm:$0xf]  ;;  %v2484_v43 = vor.u32 %v3244_v31, %v2481_v33  ;;  %v2593_v61 = vld [vmem:[%s5136_s1 + $0x3b8] sm:$0xf0] }
  0x96   :  { %v2612_v56 = vor.u32 %v3276_v42, %v2609_v46  ;;  %v3304_v62 = vld [vmem:[%s5136_s1 + $0x4ac] sm:$0xf]  ;;  %v2721_v63 = vld [vmem:[%s5136_s1 + $0x4b8] sm:$0xf0] }
  0x97   :  { %1476 = vmatpush.bf16.msrb.mxu3 %v2832_v39  ;;  %v2881_v39 = vld [vmem:[%s5136_s1 + $0x5f8] sm:$0xf0]  ;;  %v3236_v1 = vld [vmem:[%s5136_s1 + $0x28c] sm:$0xf] }
  0x98   :  { %1502 = vmatpush.bf16.msrb.mxu2 %v2196_v38  ;;  %v3344_v38 = vld [vmem:[%s5136_s1 + $0x5ec] sm:$0xf]  ;;  %v2849_v4 = vld [vmem:[%s5136_s1 + $0x5b8] sm:$0xf0] }
  0x99   :  { %1465 = vmatpush.bf16.msra.mxu1 %v2672_v58  ;;  %1516 = vmatpush.bf16.msrb.mxu0 %v2308_v59  ;;  %v2884_v49 = vor.u32 %v3344_v38, %v2881_v39  ;;  %v2740_v58 = vor.u32 %v3308_v47, %v2737_v48  ;;  %v3272_v59 = vld [vmem:[%s5136_s1 + $0x3ac] sm:$0xf]  ;;  %v2705_v11 = vld [vmem:[%s5136_s1 + $0x498] sm:$0xf0] }
  0x9a   :  { %v2596_v5 = vor.u32 %v3272_v59, %v2593_v61  ;;  %v3300_v10 = vld [vmem:[%s5136_s1 + $0x48c] sm:$0xf]  ;;  %v2433_v14 = vld [vmem:[%s5136_s1 + $0x278] sm:$0xf0] }
  0x9b   :  { %1477 = vmatpush.bf16.msrb.mxu3 %v2816_v53  ;;  %v3340_v53 = vld [vmem:[%s5136_s1 + $0x5cc] sm:$0xf]  ;;  %v2561_v21 = vld [vmem:[%s5136_s1 + $0x378] sm:$0xf0] }
  0x9c   :  { %1503 = vmatpush.bf16.msrb.mxu2 %v2180_v52  ;;  %v2465_v52 = vld [vmem:[%s5136_s1 + $0x2b8] sm:$0xf0]  ;;  %v2868_v0 = vor.u32 %v3340_v53, %v2865_v54  ;;  %v3232_v13 = vld [vmem:[%s5136_s1 + $0x26c] sm:$0xf] }
  0x9d   :  { %1466 = vmatpush.bf16.msra.mxu1 %v2656_v6  ;;  %1517 = vmatpush.bf16.msrb.mxu0 %v2292_v8  ;;  %v2468_v60 = vor.u32 %v3240_v50, %v2465_v52  ;;  %v2724_v6 = vor.u32 %v3304_v62, %v2721_v63  ;;  %v3268_v8 = vld [vmem:[%s5136_s1 + $0x38c] sm:$0xf]  ;;  %v2436_v20 = vor.u32 %v3232_v13, %v2433_v14  ;;  %v2817_v29 = vld [vmem:[%s5136_s1 + $0x578] sm:$0xf0]  ;;  %v2963_v14 = vld [vmem:[%s5138_s3 + $0x70] sm:$0xf] }
  0x9e   :  { %v3332_v16 = vld [vmem:[%s5136_s1 + $0x58c] sm:$0xf]  ;;  %v2545_v38 = vld [vmem:[%s5136_s1 + $0x358] sm:$0xf0] }
  0x9f   :  { %1478 = vmatpush.bf16.msrb.mxu3 %v2800_v3  ;;  %v3336_v3 = vld [vmem:[%s5136_s1 + $0x5ac] sm:$0xf]  ;;  %v2801_v47 = vld [vmem:[%s5136_s1 + $0x558] sm:$0xf0] }
  0xa0   :  { %1504 = vmatpush.bf16.msrb.mxu2 %v2164_v2  ;;  %v2449_v2 = vld [vmem:[%s5136_s1 + $0x298] sm:$0xf0]  ;;  %v2852_v12 = vor.u32 %v3336_v3, %v2849_v4  ;;  %v3264_v19 = vld [vmem:[%s5136_s1 + $0x36c] sm:$0xf] }
  0xa1   :  { %1467 = vmatpush.bf16.msra.mxu1 %v2640_v22  ;;  %1518 = vmatpush.bf16.msrb.mxu0 %v2276_v23  ;;  %v2452_v9 = vor.u32 %v3236_v1, %v2449_v2  ;;  %v3296_v22 = vld [vmem:[%s5136_s1 + $0x46c] sm:$0xf]  ;;  %v2689_v23 = vld [vmem:[%s5136_s1 + $0x478] sm:$0xf0]  ;;  %v4626_v25 = vpop.f32.mrf.mxu1  ;;  %v4701_v2 = vld [vmem:[%s5137_s2] sm:$0xf] }
  0xa2   :  { %v3228_v26 = vld [vmem:[%s5136_s1 + $0x24c] sm:$0xf]  ;;  %v2692_v33 = vor.u32 %v3296_v22, %v2689_v23  ;;  %v2529_v53 = vld [vmem:[%s5136_s1 + $0x338] sm:$0xf0] }
  0xa3   :  { %1479 = vmatpush.bf16.msrb.mxu3 %v2784_v18  ;;  %v2708_v18 = vor.u32 %v3300_v10, %v2705_v11  ;;  %v3328_v28 = vld [vmem:[%s5136_s1 + $0x56c] sm:$0xf]  ;;  %v2785_v63 = vld [vmem:[%s5136_s1 + $0x538] sm:$0xf0] }
  0xa4   :  { %1505 = vmatpush.bf16.msrb.mxu2 %v2148_v15  ;;  %1468 = vmatmul.bf16.vlgmr.msra.gmra.mxu1 %v3925_v30  ;;  %v4606_v15 = vpop.f32.mrf.mxu0  ;;  %v3260_v34 = vld [vmem:[%s5136_s1 + $0x34c] sm:$0xf]  ;;  %v2897_v1 = vld [vmem:[%s5136_s1 + $0x618] sm:$0xf0] }
  0xa5   :  { %1525 = vmatpush.bf16.msrb.mxu1 %v2500_v27  ;;  %1519 = vmatpush.bf16.msrb.mxu0 %v2260_v44  ;;  %v2417_v27 = vld [vmem:[%s5136_s1 + $0x258] sm:$0xf0]  ;;  %v3292_v39 = vld [vmem:[%s5136_s1 + $0x44c] sm:$0xf]  ;;  %v2548_v48 = vor.u32 %v3260_v34, %v2545_v38  ;;  %v2947_v38 = vld [vmem:[%s5138_s3 + $0x50] sm:$0xf] }
  0xa6   :  { %v2420_v36 = vor.u32 %v3228_v26, %v2417_v27  ;;  %v3224_v42 = vld [vmem:[%s5136_s1 + $0x22c] sm:$0xf]  ;;  %v2641_v10 = vld [vmem:[%s5136_s1 + $0x418] sm:$0xf0]  ;;  %v2955_v26 = vld [vmem:[%s5138_s3 + $0x60] sm:$0xf] }
  0xa7   :  { %1480 = vmatpush.bf16.msrb.mxu3 %v2768_v37  ;;  %v3324_v46 = vld [vmem:[%s5136_s1 + $0x54c] sm:$0xf]  ;;  %v3364_v27 = vld [vmem:[%s5138_s3 + $0x64] sm:$0xf0] }
  0xa8   :  { %1506 = vmatpush.bf16.msrb.mxu2 %v2132_v32  ;;  %1520 = vmatmul.bf16.vlgmr.msrb.gmra.mxu0 %v3755_v7  ;;  %v2833_v7 = vld [vmem:[%s5136_s1 + $0x598] sm:$0xf0]  ;;  %v2564_v32 = vor.u32 %v3264_v19, %v2561_v21  ;;  %v3256_v50 = vld [vmem:[%s5136_s1 + $0x32c] sm:$0xf]  ;;  %v3382_v19 = vld [vmem:[%s5138_s3 + $0xf4] sm:$0xf0] }
  0xa9   :  { %1526 = vmatpush.bf16.msrb.mxu1 %v2484_v43  ;;  %1564 = vmatpush.bf16.msra.mxu0 %v2884_v49  ;;  %v2836_v24 = vor.u32 %v3332_v16, %v2833_v7  ;;  %v4640_v31 = vpop.f32.mrf.mxu2  ;;  %v4645_v37 = vpop.f32.mrf.mxu3  ;;  %v2401_v43 = vld [vmem:[%s5136_s1 + $0x238] sm:$0xf0]  ;;  %v3288_v54 = vld [vmem:[%s5136_s1 + $0x42c] sm:$0xf]  ;;  %v2532_v4 = vor.u32 %v3256_v50, %v2529_v53  ;;  %v3366_v16 = vld [vmem:[%s5138_s3 + $0x74] sm:$0xf0] }
  0xaa   :  { %1481 = vmatmul.bf16.vlgmr.msrb.gmra.mxu3 %v3936_v35  ;;  %v2404_v52 = vor.u32 %v3224_v42, %v2401_v43  ;;  %v3220_v59 = vld [vmem:[%s5136_s1 + $0x20c] sm:$0xf]  ;;  %v1250_v62 = vpop.f32.mrf.mxu1  ;;  %v2964_v23 = vor.u32 %v3366_v16, %v2963_v14  ;;  %v3360_v43 = vld [vmem:[%s5138_s3 + $0x44] sm:$0xf0]  ;;  %v2931_v50 = vld [vmem:[%s5138_s3 + $0x30] sm:$0xf] }
  0xab   :  { %1538 = vmatpush.bf16.msra.mxu3 %v2628_v40  ;;  %1507 = vmatmul.bf16.vlgmr.msrb.gmra.mxu2 %v3722_v55  ;;  %v2577_v55 = vld [vmem:[%s5136_s1 + $0x398] sm:$0xf0]  ;;  %v3320_v61 = vld [vmem:[%s5136_s1 + $0x52c] sm:$0xf]  ;;  %v3352_v14 = vld [vmem:[%s5138_s3 + $0x4] sm:$0xf0] }
  0xac   :  { %1551 = vmatpush.bf16.msra.mxu2 %v2756_v41  ;;  %v2580_v17 = vor.u32 %v3268_v8, %v2577_v55  ;;  %v2673_v40 = vld [vmem:[%s5136_s1 + $0x458] sm:$0xf0]  ;;  %v2820_v41 = vor.u32 %v3328_v28, %v2817_v29  ;;  %v1237_v44 = vpop.f32.mrf.mxu0  ;;  %v3284_v55 = vld [vmem:[%s5136_s1 + $0x40c] sm:$0xf]  ;;  %v3019_v29 = vld [vmem:[%s5138_s3 + $0xe0] sm:$0xf] }
  0xad   :  { %1527 = vmatpush.bf16.msrb.mxu1 %v2468_v60  ;;  %1565 = vmatpush.bf16.msra.mxu0 %v2868_v0  ;;  %v2676_v49 = vor.u32 %v3292_v39, %v2673_v40  ;;  %v2385_v60 = vld [vmem:[%s5136_s1 + $0x218] sm:$0xf0]  ;;  %v3348_v0 = vld [vmem:[%s5136_s1 + $0x60c] sm:$0xf]  ;;  %v2644_v22 = vor.u32 %v3284_v55, %v2641_v10  ;;  %v3362_v39 = vld [vmem:[%s5138_s3 + $0x54] sm:$0xf0] }
  0xae   :  { %v2388_v8 = vor.u32 %v3220_v59, %v2385_v60  ;;  %v2900_v13 = vor.u32 %v3348_v0, %v2897_v1  ;;  %v3316_v7 = vld [vmem:[%s5136_s1 + $0x50c] sm:$0xf]  ;;  %v2948_v42 = vor.u32 %v3362_v39, %v2947_v38  ;;  %v2923_v60 = vld [vmem:[%s5138_s3 + $0x20] sm:$0xf]  ;;  %v3372_v1 = vld [vmem:[%s5138_s3 + $0xa4] sm:$0xf0] }
  0xaf   :  { %1539 = vmatpush.bf16.msra.mxu3 %v2612_v56  ;;  %v2657_v56 = vld [vmem:[%s5136_s1 + $0x438] sm:$0xf0]  ;;  %v3370_v10 = vld [vmem:[%s5138_s3 + $0x94] sm:$0xf0]  ;;  %v3365_v16 = vld [vmem:[%s5138_s3 + $0x74] sm:$0xf] }
  0xb0   :  { %1552 = vmatpush.bf16.msra.mxu2 %v2740_v58  ;;  %v2804_v58 = vor.u32 %v3324_v46, %v2801_v47 }
  0xb1   :  { %1528 = vmatpush.bf16.msrb.mxu1 %v2452_v9  ;;  %1566 = vmatpush.bf16.msra.mxu0 %v2852_v12  ;;  %v1263_v3 = vpop.f32.mrf.mxu2  ;;  %v2513_v9 = vld [vmem:[%s5136_s1 + $0x318] sm:$0xf0]  ;;  %v1276_v11 = vpop.f32.mrf.mxu3  ;;  %v2788_v12 = vor.u32 %v3320_v61, %v2785_v63  ;;  %v3356_v61 = vld [vmem:[%s5138_s3 + $0x24] sm:$0xf0] }
  0xb3   :  { %1540 = vmatpush.bf16.msra.mxu3 %v2596_v5  ;;  %v2660_v5 = vor.u32 %v3288_v54, %v2657_v56  ;;  %v2995_v54 = vld [vmem:[%s5138_s3 + $0xb0] sm:$0xf] }
  0xb4   :  { %1553 = vmatpush.bf16.msra.mxu2 %v2724_v6  ;;  %v3252_v6 = vld [vmem:[%s5136_s1 + $0x30c] sm:$0xf] }
  0xb5   :  { %1529 = vmatpush.bf16.msrb.mxu1 %v2436_v20  ;;  %1567 = vmatpush.bf16.msra.mxu0 %v2836_v24  ;;  %v234_v20 = vperm.slane %v4701_v2, 0  ;;  %v2516_v21 = vor.u32 %v3252_v6, %v2513_v9  ;;  %v3354_v9 = vld [vmem:[%s5138_s3 + $0x14] sm:$0xf0] }
  0xb7   :  { %1541 = vmatpush.bf16.msra.mxu3 %v2580_v17  ;;  %v2769_v17 = vld [vmem:[%s5136_s1 + $0x518] sm:$0xf0] }
  0xb8   :  { %1554 = vmatpush.bf16.msra.mxu2 %v2708_v18  ;;  %v3027_v18 = vld [vmem:[%s5138_s3 + $0xf0] sm:$0xf]  ;;  %v2772_v24 = vor.u32 %v3316_v7, %v2769_v17 }
  0xb9   :  { %1530 = vmatpush.bf16.msrb.mxu1 %v2420_v36  ;;  %1568 = vmatpush.bf16.msra.mxu0 %v2820_v41  ;;  %v3028_v28 = vor.u32 %v3382_v19, %v3027_v18  ;;  %v1313_v34 = vpop.f32.mrf.mxu2  ;;  %v2956_v36 = vor.u32 %v3364_v27, %v2955_v26  ;;  %v2965_v18 = vld [vmem:[%s5138_s3 + $0x78] sm:$0xf0]  ;;  %v2971_v19 = vld [vmem:[%s5138_s3 + $0x80] sm:$0xf] }
  0xba   :  { %v2968_v27 = vor.u32 %v3365_v16, %v2965_v18  ;;  %v2917_v16 = vld [vmem:[%s5138_s3 + $0x18] sm:$0xf0]  ;;  %v3369_v18 = vld [vmem:[%s5138_s3 + $0x94] sm:$0xf] }
  0xbb   :  { %1542 = vmatpush.bf16.msra.mxu3 %v2564_v32  ;;  %v3380_v32 = vld [vmem:[%s5138_s3 + $0xe4] sm:$0xf0] }
  0xbc   :  { %1555 = vmatpush.bf16.msra.mxu2 %v2692_v33  ;;  %v1236_v33 = vadd.f32 %v4606_v15, %v234_v20  ;;  %v3020_v40 = vor.u32 %v3380_v32, %v3019_v29  ;;  %v3378_v15 = vld [vmem:[%s5138_s3 + $0xd4] sm:$0xf0]  ;;  %v3368_v20 = vld [vmem:[%s5138_s3 + $0x84] sm:$0xf0]  ;;  %v3363_v29 = vld [vmem:[%s5138_s3 + $0x64] sm:$0xf] }
  0xbd   :  { %1531 = vmatpush.bf16.msrb.mxu1 %v2404_v52  ;;  %1569 = vmatpush.bf16.msra.mxu0 %v2804_v58  ;;  %v3358_v52 = vld [vmem:[%s5138_s3 + $0x34] sm:$0xf0]  ;;  %v2957_v32 = vld [vmem:[%s5138_s3 + $0x68] sm:$0xf0] }
  0xbe   :  { %v1249_v41 = vadd.f32 %v4626_v25, %v1236_v33  ;;  %v3003_v25 = vld [vmem:[%s5138_s3 + $0xc0] sm:$0xf]  ;;  %v2932_v58 = vor.u32 %v3358_v52, %v2931_v50  ;;  %v2960_v39 = vor.u32 %v3363_v29, %v2957_v32  ;;  %v3396_v52 = vld [vmem:[%s5138_s3 + $0x164] sm:$0xf0]  ;;  %v3059_v29 = vld [vmem:[%s5138_s3 + $0x130] sm:$0xf] }
  0xbf   :  { %1543 = vmatpush.bf16.msra.mxu3 %v2548_v48  ;;  %v3083_v50 = vld [vmem:[%s5138_s3 + $0x160] sm:$0xf]  ;;  %v3390_v32 = vld [vmem:[%s5138_s3 + $0x134] sm:$0xf0] }
  0xc0   :  { %1556 = vmatpush.bf16.msra.mxu2 %v2676_v49  ;;  %v1287_v46 = vpop.f32.mrf.mxu0 }
  0xc1   :  { %1532 = vmatpush.bf16.msrb.mxu1 %v2388_v8  ;;  %1570 = vmatpush.bf16.msra.mxu0 %v2788_v12  ;;  %v1315_v48 = vpop.f32.mrf.mxu2  ;;  %v2915_v8 = vld [vmem:[%s5138_s3 + $0x10] sm:$0xf] }
  0xc2   :  { %v2916_v11 = vor.u32 %v3354_v9, %v2915_v8  ;;  %v3075_v9 = vld [vmem:[%s5138_s3 + $0x150] sm:$0xf] }
  0xc3   :  { %1544 = vmatpush.bf16.msra.mxu3 %v2532_v4  ;;  %v1300_v47 = vpop.f32.mrf.mxu1  ;;  %v2924_v4 = vor.u32 %v3356_v61, %v2923_v60  ;;  %v3084_v60 = vor.u32 %v3396_v52, %v3083_v50  ;;  %v3373_v61 = vld [vmem:[%s5138_s3 + $0xb4] sm:$0xf]  ;;  %v3384_v50 = vld [vmem:[%s5138_s3 + $0x104] sm:$0xf0] }
  0xc4   :  { %1557 = vmatpush.bf16.msra.mxu2 %v2660_v5  ;;  %1533 = vmatmul.bf16.vlgmr.msrb.gmra.mxu1 %v3711_v51  ;;  %v3011_v51 = vld [vmem:[%s5138_s3 + $0xd0] sm:$0xf] }
  0xc5   :  { %1584 = vmatpush.bf16.msra.mxu1 %v2900_v13  ;;  %1571 = vmatpush.bf16.msra.mxu0 %v2772_v24  ;;  %v3012_v44 = vor.u32 %v3378_v15, %v3011_v51  ;;  %v2907_v13 = vld [vmem:[%s5138_s3] sm:$0xf]  ;;  %v2949_v51 = vld [vmem:[%s5138_s3 + $0x58] sm:$0xf0] }
  0xc7   :  { %1545 = vmatpush.bf16.msra.mxu3 %v2516_v21  ;;  %v3381_v21 = vld [vmem:[%s5138_s3 + $0xf4] sm:$0xf] }
  0xc8   :  { %1558 = vmatpush.bf16.msra.mxu2 %v2644_v22  ;;  %1572 = vmatmul.bf16.vlgmr.msra.gmra.mxu0 %v3936_v35  ;;  %v1262_v35 = vadd.f32 %v4640_v31, %v1249_v41  ;;  %v3374_v31 = vld [vmem:[%s5138_s3 + $0xb4] sm:$0xf0]  ;;  %v1289_v0 = vpop.f32.mrf.mxu0  ;;  %v3029_v22 = vld [vmem:[%s5138_s3 + $0xf8] sm:$0xf0]  ;;  %v3377_v41 = vld [vmem:[%s5138_s3 + $0xd4] sm:$0xf] }
  0xc9   :  { %2006 = vmatpush.bf16.msrb.mxu1 %v3028_v28  ;;  %v2996_v62 = vor.u32 %v3374_v31, %v2995_v54  ;;  %v4796_v63 = vpop.f32.mrf.mxu3  ;;  %v2972_v28 = vor.u32 %v3368_v20, %v2971_v19  ;;  %v3032_v33 = vor.u32 %v3381_v21, %v3029_v22  ;;  %v235_v54 = vperm.slane %v4701_v2, 1  ;;  %v3067_v19 = vld [vmem:[%s5138_s3 + $0x140] sm:$0xf]  ;;  %v3392_v20 = vld [vmem:[%s5138_s3 + $0x144] sm:$0xf0] }
  0xca   :  { %1546 = vmatmul.bf16.vlgmr.msra.gmra.mxu3 %v3724_v57  ;;  %v2939_v57 = vld [vmem:[%s5138_s3 + $0x40] sm:$0xf]  ;;  %v1275_v56 = vadd.f32 %v4645_v37, %v1262_v35  ;;  %v3091_v35 = vld [vmem:[%s5138_s3 + $0x170] sm:$0xf]  ;;  %v3068_v22 = vor.u32 %v3392_v20, %v3067_v19  ;;  %v3061_v19 = vld [vmem:[%s5138_s3 + $0x138] sm:$0xf0] }
  0xcb   :  { %1993 = vmatpush.bf16.msrb.mxu3 %v2964_v23  ;;  %1559 = vmatmul.bf16.vlgmr.msra.gmra.mxu2 %v3925_v30  ;;  %v3376_v30 = vld [vmem:[%s5138_s3 + $0xc4] sm:$0xf0]  ;;  %v2940_v49 = vor.u32 %v3360_v43, %v2939_v57  ;;  %v2987_v37 = vld [vmem:[%s5138_s3 + $0xa0] sm:$0xf]  ;;  %v1302_v3 = vpop.f32.mrf.mxu1  ;;  %v2908_v23 = vor.u32 %v3352_v14, %v2907_v13  ;;  %v3359_v43 = vld [vmem:[%s5138_s3 + $0x44] sm:$0xf] }
  0xcc   :  { %v3004_v53 = vor.u32 %v3376_v30, %v3003_v25  ;;  %v1288_v59 = vadd.f32 %v1287_v46, %v1275_v56  ;;  %v2988_v55 = vor.u32 %v3372_v1, %v2987_v37  ;;  %v3375_v25 = vld [vmem:[%s5138_s3 + $0xc4] sm:$0xf]  ;;  %v3005_v30 = vld [vmem:[%s5138_s3 + $0xc8] sm:$0xf0]  ;;  %v3357_v56 = vld [vmem:[%s5138_s3 + $0x34] sm:$0xf]  ;;  %v1327_v37 = vadd.f32 %v4796_v63, %v235_v54 }
  0xcd   :  { %2007 = vmatpush.bf16.msrb.mxu1 %v3020_v40  ;;  %v3361_v40 = vld [vmem:[%s5138_s3 + $0x54] sm:$0xf]  ;;  %v3355_v1 = vld [vmem:[%s5138_s3 + $0x24] sm:$0xf]  ;;  %v2925_v3 = vld [vmem:[%s5138_s3 + $0x28] sm:$0xf0] }
  0xce   :  { %v4806_v5 = vpop.f32.mrf.mxu2  ;;  %v1301_v6 = vadd.f32 %v1300_v47, %v1288_v59  ;;  %v2952_v57 = vor.u32 %v3361_v40, %v2949_v51  ;;  %v3398_v47 = vld [vmem:[%s5138_s3 + $0x174] sm:$0xf0]  ;;  %v3008_v59 = vor.u32 %v3375_v25, %v3005_v30  ;;  %v2989_v63 = vld [vmem:[%s5138_s3 + $0xa8] sm:$0xf0]  ;;  %v3353_v14 = vld [vmem:[%s5138_s3 + $0x14] sm:$0xf] }
  0xcf   :  { %1994 = vmatpush.bf16.msrb.mxu3 %v2956_v36  ;;  %v3021_v36 = vld [vmem:[%s5138_s3 + $0xe8] sm:$0xf0]  ;;  %v1340_v13 = vadd.f32 %v4806_v5, %v1327_v37  ;;  %v2981_v5 = vld [vmem:[%s5138_s3 + $0x98] sm:$0xf0]  ;;  %v3388_v40 = vld [vmem:[%s5138_s3 + $0x124] sm:$0xf0] }
  0xd0   :  { %v1314_v12 = vadd.f32 %v1313_v34, %v1301_v6  ;;  %v3379_v34 = vld [vmem:[%s5138_s3 + $0xe4] sm:$0xf]  ;;  %v3397_v54 = vld [vmem:[%s5138_s3 + $0x174] sm:$0xf] }
  0xd1   :  { %2008 = vmatpush.bf16.msrb.mxu1 %v3012_v44  ;;  %v1328_v17 = vpop.f32.mrf.mxu3  ;;  %v3024_v15 = vor.u32 %v3379_v34, %v3021_v36  ;;  %v2941_v44 = vld [vmem:[%s5138_s3 + $0x48] sm:$0xf0]  ;;  %v3371_v6 = vld [vmem:[%s5138_s3 + $0xa4] sm:$0xf]  ;;  %v3060_v36 = vor.u32 %v3390_v32, %v3059_v29 }
  0xd2   :  { %v1590_v26 = vmax.f32 %v1314_v12, 0.0  ;;  %v2928_v12 = vor.u32 %v3355_v1, %v2925_v3  ;;  %v2992_v17 = vor.u32 %v3371_v6, %v2989_v63  ;;  %v2973_v34 = vld [vmem:[%s5138_s3 + $0x88] sm:$0xf0]  ;;  %v3077_v6 = vld [vmem:[%s5138_s3 + $0x158] sm:$0xf0] }
  0xd3   :  { %1995 = vmatpush.bf16.msrb.mxu3 %v2948_v42  ;;  %v3013_v42 = vld [vmem:[%s5138_s3 + $0xd8] sm:$0xf0]  ;;  %v3147_v63 = vld [vmem:[%s5138_s3 + $0x1e0] sm:$0xf] }
  0xd4   :  { %2904 = vmatmul.msk.bf16.vlgmr.msra.gmra.mxu1 %vm1222_vm0, %v3834_v45  ;;  %v2979_v45 = vld [vmem:[%s5138_s3 + $0x90] sm:$0xf]  ;;  %v4856_v38 = vpack.c.bf16 %v1590_v26, %v1590_v26  ;;  %v3016_v46 = vor.u32 %v3377_v41, %v3013_v42  ;;  %v2909_v26 = vld [vmem:[%s5138_s3 + $0x8] sm:$0xf0] }
  0xd5   :  { %2009 = vmatpush.bf16.msrb.mxu1 %v3004_v53  ;;  %v2980_v7 = vor.u32 %v3370_v10, %v2979_v45  ;;  %v2944_v53 = vor.u32 %v3359_v43, %v2941_v44  ;;  %v3043_v44 = vld [vmem:[%s5138_s3 + $0x110] sm:$0xf] }
  0xd6   :  { %v1341_v24 = vpop.f32.mrf.mxu2 }
  0xd7   :  { %1996 = vmatpush.bf16.msrb.mxu3 %v2940_v49  ;;  %v3092_v49 = vor.u32 %v3398_v47, %v3091_v35  ;;  %v3351_v24 = vld [vmem:[%s5138_s3 + $0x4] sm:$0xf] }
  0xd9   :  { %2010 = vmatpush.bf16.msrb.mxu1 %v2996_v62  ;;  %2019 = vmatpush.bf16.msrb.mxu2 %v3092_v49  ;;  %v2997_v62 = vld [vmem:[%s5138_s3 + $0xb8] sm:$0xf0]  ;;  %v3035_v49 = vld [vmem:[%s5138_s3 + $0x100] sm:$0xf] }
  0xdb   :  { %1997 = vmatpush.bf16.msrb.mxu3 %v2932_v58  ;;  %v2933_v58 = vld [vmem:[%s5138_s3 + $0x38] sm:$0xf0] }
  0xdc   :  { %v2936_v0 = vor.u32 %v3357_v56, %v2933_v58  ;;  %v3085_v58 = vld [vmem:[%s5138_s3 + $0x168] sm:$0xf0] }
  0xdd   :  { %2011 = vmatpush.bf16.msrb.mxu1 %v2988_v55  ;;  %2020 = vmatpush.bf16.msrb.mxu2 %v3084_v60  ;;  %v3394_v55 = vld [vmem:[%s5138_s3 + $0x154] sm:$0xf0] }
  0xde   :  { %v3076_v10 = vor.u32 %v3394_v55, %v3075_v9  ;;  %v3412_v9 = vld [vmem:[%s5138_s3 + $0x1e4] sm:$0xf0] }
  0xdf   :  { %1998 = vmatpush.bf16.msrb.mxu3 %v2924_v4  ;;  %v3000_v4 = vor.u32 %v3373_v61, %v2997_v62  ;;  %v3148_v55 = vor.u32 %v3412_v9, %v3147_v63  ;;  %v3141_v63 = vld [vmem:[%s5138_s3 + $0x1d8] sm:$0xf0] }
  0xe1   :  { %2012 = vmatpush.bf16.msrb.mxu1 %v2980_v7  ;;  %v1352_v48 = vpop.f32.mrf.mxu0  ;;  %2021 = vmatpush.bf16.msrb.mxu2 %v3076_v10 }
  0xe2   :  { %v1353_v21 = vadd.f32 %v1352_v48, %v1340_v13 }
  0xe3   :  { %1999 = vmatpush.bf16.msrb.mxu3 %v2916_v11  ;;  %v1365_v31 = vpop.f32.mrf.mxu1 }
  0xe4   :  { %v1366_v51 = vadd.f32 %v1365_v31, %v1353_v21  ;;  %v3395_v31 = vld [vmem:[%s5138_s3 + $0x164] sm:$0xf]  ;;  %v3131_v21 = vld [vmem:[%s5138_s3 + $0x1c0] sm:$0xf] }
  0xe5   :  { %2013 = vmatpush.bf16.msrb.mxu1 %v2972_v28  ;;  %v3367_v28 = vld [vmem:[%s5138_s3 + $0x84] sm:$0xf]  ;;  %2022 = vmatpush.bf16.msrb.mxu2 %v3068_v22  ;;  %v3408_v22 = vld [vmem:[%s5138_s3 + $0x1c4] sm:$0xf0] }
  0xe7   :  { %2000 = vmatpush.bf16.msrb.mxu3 %v2908_v23  ;;  %v2920_v23 = vor.u32 %v3353_v14, %v2917_v16 }
  0xe9   :  { %2058 = vmatpush.bf16.msra.mxu1 %v3032_v33  ;;  %v1378_v8 = vpop.f32.mrf.mxu3  ;;  %v1354_v45 = vpop.f32.mrf.mxu0  ;;  %2023 = vmatpush.bf16.msrb.mxu2 %v3060_v36  ;;  %v3385_v36 = vld [vmem:[%s5138_s3 + $0x114] sm:$0xf] }
  0xea   :  { %2001 = vmatmul.bf16.vlgmr.msrb.gmra.mxu3 %v4856_v38  ;;  %v1379_v42 = vadd.f32 %v1378_v8, %v1366_v51 }
  0xeb   :  { %2045 = vmatpush.bf16.msra.mxu3 %v2968_v27  ;;  %v1367_v7 = vpop.f32.mrf.mxu1  ;;  %v2984_v27 = vor.u32 %v3369_v18, %v2981_v5  ;;  %v3389_v5 = vld [vmem:[%s5138_s3 + $0x134] sm:$0xf] }
  0xec   :  { %v3139_v7 = vld [vmem:[%s5138_s3 + $0x1d0] sm:$0xf]  ;;  %v3064_v20 = vor.u32 %v3389_v5, %v3061_v19  ;;  %v3403_v19 = vld [vmem:[%s5138_s3 + $0x1a4] sm:$0xf] }
  0xed   :  { %2059 = vmatpush.bf16.msra.mxu1 %v3024_v15  ;;  %v2912_v15 = vor.u32 %v3351_v24, %v2909_v26  ;;  %v3132_v24 = vor.u32 %v3408_v22, %v3131_v21  ;;  %v3053_v26 = vld [vmem:[%s5138_s3 + $0x128] sm:$0xf0]  ;;  %v3401_v22 = vld [vmem:[%s5138_s3 + $0x194] sm:$0xf] }
  0xee   :  { %v1391_v11 = vpop.f32.mrf.mxu2 }
  0xef   :  { %2046 = vmatpush.bf16.msra.mxu3 %v2960_v39  ;;  %v3051_v39 = vld [vmem:[%s5138_s3 + $0x120] sm:$0xf]  ;;  %v1392_v25 = vadd.f32 %v1391_v11, %v1379_v42  ;;  %v3391_v11 = vld [vmem:[%s5138_s3 + $0x144] sm:$0xf] }
  0xf0   :  { %v3052_v43 = vor.u32 %v3388_v40, %v3051_v39  ;;  %v3045_v39 = vld [vmem:[%s5138_s3 + $0x118] sm:$0xf0]  ;;  %v236_v40 = vperm.slane %v4701_v2, 2 }
  0xf1   :  { %2060 = vmatpush.bf16.msra.mxu1 %v3016_v46  ;;  %v1380_v33 = vpop.f32.mrf.mxu3  ;;  %v3386_v46 = vld [vmem:[%s5138_s3 + $0x114] sm:$0xf0]  ;;  %v3048_v42 = vor.u32 %v3385_v36, %v3045_v39 }
  0xf2   :  { %2024 = vmatpush.bf16.msrb.mxu2 %v3052_v43  ;;  %v3044_v30 = vor.u32 %v3386_v46, %v3043_v44  ;;  %v3383_v46 = vld [vmem:[%s5138_s3 + $0x104] sm:$0xf] }
  0xf3   :  { %2047 = vmatpush.bf16.msra.mxu3 %v2952_v57  ;;  %v2976_v57 = vor.u32 %v3367_v28, %v2973_v34  ;;  %v3406_v28 = vld [vmem:[%s5138_s3 + $0x1b4] sm:$0xf0] }
  0xf5   :  { %2061 = vmatpush.bf16.msra.mxu1 %v3008_v59  ;;  %v4998_v59 = vld [vmem:[%s5138_s3 + $0x1f0] sm:$0x33] }
  0xf6   :  { %v1393_v41 = vpop.f32.mrf.mxu2  ;;  %2025 = vmatpush.bf16.msrb.mxu2 %v3044_v30  ;;  %v1854_v60 = vunpack.c.l.b16 %v4998_v59 }
  0xf7   :  { %2048 = vmatpush.bf16.msra.mxu3 %v2944_v53  ;;  %v3036_v53 = vor.u32 %v3384_v50, %v3035_v49  ;;  %v3404_v41 = vld [vmem:[%s5138_s3 + $0x1a4] sm:$0xf0] }
  0xf8   :  { %v1918_v37 = vpack.c.b16 %v1854_v60, %v1854_v60 }
  0xf9   :  { %2062 = vmatpush.bf16.msra.mxu1 %v3000_v4  ;;  %v1404_v35 = vpop.f32.mrf.mxu3  ;;  %v3393_v4 = vld [vmem:[%s5138_s3 + $0x154] sm:$0xf] }
  0xfa   :  { %v1405_v47 = vadd.f32 %v1404_v35, %v1392_v25  ;;  %2026 = vmatpush.bf16.msrb.mxu2 %v3036_v53  ;;  %v1988_v3 = vsel %vm1986_vm1, %v1918_v37, 0  ;;  %v3080_v8 = vor.u32 %v3393_v4, %v3077_v6  ;;  %v3037_v25 = vld [vmem:[%s5138_s3 + $0x108] sm:$0xf0] }
  0xfb   :  { %2049 = vmatpush.bf16.msra.mxu3 %v2936_v0  ;;  %v3088_v0 = vor.u32 %v3395_v31, %v3085_v58  ;;  %2032 = vmatpush.bf16.msrb.mxu0 %v1988_v3  ;;  %v3040_v35 = vor.u32 %v3383_v46, %v3037_v25 }
  0xfc   :  { %v1591_v48 = vmax.f32 %v1405_v47, 0.0  ;;  %v3107_v47 = vld [vmem:[%s5138_s3 + $0x190] sm:$0xf] }
  0xfd   :  { %2063 = vmatpush.bf16.msra.mxu1 %v2992_v17  ;;  %v3410_v17 = vld [vmem:[%s5138_s3 + $0x1d4] sm:$0xf0] }
  0xfe   :  { %v1595_v52 = vpack.c.bf16 %v1591_v48, %v1591_v48  ;;  %v3140_v18 = vor.u32 %v3410_v17, %v3139_v7  ;;  %v3402_v48 = vld [vmem:[%s5138_s3 + $0x194] sm:$0xf0]  ;;  %v3405_v17 = vld [vmem:[%s5138_s3 + $0x1b4] sm:$0xf] }
  0xff   :  { %2050 = vmatpush.bf16.msra.mxu3 %v2928_v12  ;;  %2033 = vmatpush.bf16.msrb.mxu0 %v3148_v55  ;;  %v3069_v12 = vld [vmem:[%s5138_s3 + $0x148] sm:$0xf0]  ;;  %v3108_v49 = vor.u32 %v3402_v48, %v3107_v47 }
 0x100   :  { %2014 = vmatmul.bf16.vlgmr.msrb.gmra.mxu1 %v1595_v52  ;;  %v3072_v16 = vor.u32 %v3391_v11, %v3069_v12  ;;  %v3407_v11 = vld [vmem:[%s5138_s3 + $0x1c4] sm:$0xf]  ;;  %v3133_v12 = vld [vmem:[%s5138_s3 + $0x1c8] sm:$0xf0] }
 0x101   :  { %2064 = vmatpush.bf16.msra.mxu1 %v2984_v27  ;;  %v1406_v61 = vpop.f32.mrf.mxu3  ;;  %v5001_v62 = vpop.f32.mrf.mxu0  ;;  %v3123_v27 = vld [vmem:[%s5138_s3 + $0x1b0] sm:$0xf] }
 0x102   :  { %v3124_v34 = vor.u32 %v3406_v28, %v3123_v27  ;;  %v3399_v27 = vld [vmem:[%s5138_s3 + $0x184] sm:$0xf]  ;;  %v3101_v28 = vld [vmem:[%s5138_s3 + $0x188] sm:$0xf0] }
 0x103   :  { %2051 = vmatpush.bf16.msra.mxu3 %v2920_v23  ;;  %v1417_v1 = vpop.f32.mrf.mxu1  ;;  %2034 = vmatpush.bf16.msrb.mxu0 %v3140_v18  ;;  %v3387_v23 = vld [vmem:[%s5138_s3 + $0x124] sm:$0xf]  ;;  %v3125_v18 = vld [vmem:[%s5138_s3 + $0x1b8] sm:$0xf0] }
 0x104   :  { %v3056_v33 = vor.u32 %v3387_v23, %v3053_v26  ;;  %v1418_v43 = vadd.f32 %v1417_v1, %v236_v40  ;;  %v3128_v5 = vor.u32 %v3405_v17, %v3125_v18  ;;  %v3109_v23 = vld [vmem:[%s5138_s3 + $0x198] sm:$0xf0] }
 0x105   :  { %2065 = vmatpush.bf16.msra.mxu1 %v2976_v57  ;;  %v3112_v26 = vor.u32 %v3401_v22, %v3109_v23 }
 0x107   :  { %2052 = vmatpush.bf16.msra.mxu3 %v2912_v15  ;;  %2035 = vmatpush.bf16.msrb.mxu0 %v3132_v24  ;;  %v3115_v15 = vld [vmem:[%s5138_s3 + $0x1a0] sm:$0xf]  ;;  %v237_v24 = vperm.slane %v4701_v2, 3 }
 0x108   :  { %v3116_v57 = vor.u32 %v3404_v41, %v3115_v15 }
 0x109   :  { %v1445_v10 = vpop.f32.mrf.mxu0 }
 0x10a   :  { %2053 = vmatmul.bf16.vlgmr.msra.gmra.mxu3 %v4856_v38  ;;  %v3093_v38 = vld [vmem:[%s5138_s3 + $0x178] sm:$0xf0] }
 0x10b   :  { %v3096_v56 = vor.u32 %v3397_v54, %v3093_v38  ;;  %v1419_v14 = vpop.f32.mrf.mxu1  ;;  %2036 = vmatpush.bf16.msrb.mxu0 %v3124_v34  ;;  %v3099_v54 = vld [vmem:[%s5138_s3 + $0x180] sm:$0xf]  ;;  %v3400_v38 = vld [vmem:[%s5138_s3 + $0x184] sm:$0xf0] }
 0x10c   :  { %v3100_v31 = vor.u32 %v3400_v38, %v3099_v54  ;;  %v3136_v14 = vor.u32 %v3407_v11, %v3133_v12 }
 0x10d   :  { %2071 = vmatpush.bf16.msra.mxu2 %v3096_v56  ;;  %v1430_v45 = vpop.f32.mrf.mxu3 }
 0x10e   :  { %v1456_v13 = vpop.f32.mrf.mxu2  ;;  %v1431_v30 = vadd.f32 %v1430_v45, %v1418_v43 }
 0x10f   :  { %2037 = vmatpush.bf16.msrb.mxu0 %v3116_v57 }
 0x110   :  { %2066 = vmatmul.bf16.vlgmr.msra.gmra.mxu1 %v1595_v52  ;;  %v1855_v52 = vunpack.c.h.b16 %v4998_v59  ;;  %v1444_v53 = vadd.f32 %v5001_v62, %v1431_v30  ;;  %v3411_v59 = vld [vmem:[%s5138_s3 + $0x1e4] sm:$0xf]  ;;  %v3149_v62 = vld [vmem:[%s5138_s3 + $0x1e8] sm:$0xf0] }
 0x111   :  { %2072 = vmatpush.bf16.msra.mxu2 %v3088_v0  ;;  %v1495_v32 = vpop.f32.mrf.mxu0  ;;  %v3152_v1 = vor.u32 %v3411_v59, %v3149_v62 }
 0x112   :  { %v1919_v56 = vpack.c.b16 %v1855_v52, %v1855_v52  ;;  %v1457_v60 = vadd.f32 %v1456_v13, %v1444_v53 }
 0x113   :  { %2038 = vmatpush.bf16.msrb.mxu0 %v3108_v49 }
 0x114   :  { %v1991_v58 = vsel %vm1986_vm1, %v1919_v56, 0 }
 0x115   :  { %2073 = vmatpush.bf16.msra.mxu2 %v3080_v8  ;;  %v1432_v29 = vpop.f32.mrf.mxu3  ;;  %v3409_v8 = vld [vmem:[%s5138_s3 + $0x1d4] sm:$0xf] }
 0x116   :  { %v1458_v51 = vpop.f32.mrf.mxu2  ;;  %v3144_v55 = vor.u32 %v3409_v8, %v3141_v63 }
 0x117   :  { %2039 = vmatpush.bf16.msrb.mxu0 %v3100_v31 }
 0x119   :  { %2074 = vmatpush.bf16.msra.mxu2 %v3072_v16  ;;  %v1497_v44 = vpop.f32.mrf.mxu0 }
 0x11b   :  { %2084 = vmatpush.bf16.msra.mxu0 %v1991_v58 }
 0x11d   :  { %2075 = vmatpush.bf16.msra.mxu2 %v3064_v20  ;;  %v3117_v20 = vld [vmem:[%s5138_s3 + $0x1a8] sm:$0xf0] }
 0x11e   :  { %v3120_v21 = vor.u32 %v3403_v19, %v3117_v20 }
 0x11f   :  { %2085 = vmatpush.bf16.msra.mxu0 %v3152_v1 }
 0x121   :  { %2076 = vmatpush.bf16.msra.mxu2 %v3056_v33  ;;  %v1469_v50 = vpop.f32.mrf.mxu1  ;;  %v3104_v33 = vor.u32 %v3399_v27, %v3101_v28 }
 0x122   :  { %v1470_v0 = vadd.f32 %v1469_v50, %v1457_v60  ;;  %v1661_v50 = vld [vmem:[%s5139_s4] sm:$0x3]  ;;  %s3440_s4 = smov [#allocation2]  }
 0x123   :  { %2086 = vmatpush.bf16.msra.mxu0 %v3144_v55  ;;  %v1663_v52 = vperm.slane %v1661_v50, 0  ;;  %v1664_v60 = vperm.slane %v1661_v50, 1  ;;  %s2106_s21 = sshll.u32 %s3440_s4, 4  ;;  %s2107_s21 = int_to_ptr.vmem [resolvable:$true] %s2106_s21 }
 0x125   :  { %2077 = vmatpush.bf16.msra.mxu2 %v3048_v42  ;;  %v1521_v61 = vpop.f32.mrf.mxu0 }
 0x127   :  { %2087 = vmatpush.bf16.msra.mxu0 %v3136_v14 }
 0x129   :  { %2078 = vmatpush.bf16.msra.mxu2 %v3040_v35  ;;  %v1471_v37 = vpop.f32.mrf.mxu1 }
 0x12b   :  { %2088 = vmatpush.bf16.msra.mxu0 %v3128_v5 }
 0x12d   :  { %v1482_v3 = vpop.f32.mrf.mxu3  ;;  %v1523_v10 = vpop.f32.mrf.mxu0 }
 0x12e   :  { %v1483_v4 = vadd.f32 %v1482_v3, %v1470_v0  ;;  %v1508_v6 = vpop.f32.mrf.mxu2 }
 0x12f   :  { %2089 = vmatpush.bf16.msra.mxu0 %v3120_v21  ;;  %v1509_v29 = vadd.f32 %v1508_v6, %v237_v24 }
 0x130   :  { %v1496_v9 = vadd.f32 %v1495_v32, %v1483_v4 }
 0x131   :  { %v1522_v34 = vadd.f32 %v1521_v61, %v1509_v29 }
 0x132   :  { %v1592_v45 = vmax.f32 %v1496_v9, 0.0 }
 0x133   :  { %2090 = vmatpush.bf16.msra.mxu0 %v3112_v26 }
 0x134   :  { %v1596_v13 = vpack.c.bf16 %v1592_v45, %v1592_v45 }
 0x135   :  { %v1484_v16 = vpop.f32.mrf.mxu3 }
 0x136   :  { %2027 = vmatmul.bf16.vlgmr.msrb.gmra.mxu2 %v1596_v13  ;;  %v1510_v7 = vpop.f32.mrf.mxu2 }
 0x137   :  { %2091 = vmatpush.bf16.msra.mxu0 %v3104_v33 }
 0x141   :  { %v1534_v32 = vpop.f32.mrf.mxu1 }
 0x142   :  { %v1535_v39 = vadd.f32 %v1534_v32, %v1522_v34 }
 0x145   :  { %v1573_v36 = vpop.f32.mrf.mxu0 }
 0x146   :  { %2079 = vmatmul.bf16.vlgmr.msra.gmra.mxu2 %v1596_v13 }
 0x149   :  { %v1536_v2 = vpop.f32.mrf.mxu1 }
 0x14d   :  { %v1547_v40 = vpop.f32.mrf.mxu3  ;;  %v1575_v42 = vpop.f32.mrf.mxu0 }
 0x14e   :  { %v1548_v51 = vadd.f32 %v1547_v40, %v1535_v39  ;;  %v1560_v15 = vpop.f32.mrf.mxu2 }
 0x150   :  { %v1561_v41 = vadd.f32 %v1560_v15, %v1548_v51 }
 0x151   :  { %v1586_v43 = vpop.f32.mrf.mxu1 }
 0x152   :  { %v1574_v57 = vadd.f32 %v1573_v36, %v1561_v41 }
 0x154   :  { %v1587_v44 = vadd.f32 %v1586_v43, %v1574_v57 }
 0x155   :  { %v1549_v46 = vpop.f32.mrf.mxu3 }
 0x156   :  { %v1562_v25 = vpop.f32.mrf.mxu2  ;;  %v1593_v30 = vmax.f32 %v1587_v44, 0.0 }
 0x158   :  { %v1597_v35 = vpack.c.bf16 %v1593_v30, %v1593_v30 }
 0x159   :  { %v1588_v47 = vpop.f32.mrf.mxu1 }
 0x15a   :  { %3153 = vmatmul.msk.bf16.vlgmr.msrb.gmra.mxu0 %vm1982_vm2, %v1597_v35 }
 0x16a   :  { %3154 = vmatmul.msk.bf16.vlgmr.msra.gmra.mxu0 %vm1982_vm2, %v1597_v35 }
 0x16d   :  { %v2002_v48 = vpop.f32.mrf.mxu3 }
 0x16e   :  { %v2003_v53 = vadd.f32 %v2002_v48, %v1663_v52 }
 0x175   :  { %v2004_v49 = vpop.f32.mrf.mxu3 }
 0x17d   :  { %v2015_v54 = vpop.f32.mrf.mxu1 }
 0x17e   :  { %v2016_v31 = vadd.f32 %v2015_v54, %v2003_v53 }
 0x185   :  { %v2017_v56 = vpop.f32.mrf.mxu1 }
 0x18d   :  { %v2054_v38 = vpop.f32.mrf.mxu3  ;;  %v2067_v59 = vpop.f32.mrf.mxu1 }
 0x18e   :  { %v2055_v61 = vadd.f32 %v2054_v38, %v1664_v60 }
 0x190   :  { %v2068_v62 = vadd.f32 %v2067_v59, %v2055_v61 }
 0x195   :  { %v2056_v58 = vpop.f32.mrf.mxu3  ;;  %v2069_v0 = vpop.f32.mrf.mxu1 }
 0x1b9   :  { %v2028_v37 = vpop.f32.mrf.mxu2 }
 0x1ba   :  { %v2029_v6 = vadd.f32 %v2028_v37, %v2016_v31 }
 0x1c1   :  { %v2030_v1 = vpop.f32.mrf.mxu2 }
 0x1c9   :  { %v2080_v3 = vpop.f32.mrf.mxu2 }
 0x1ca   :  { %v2081_v45 = vadd.f32 %v2080_v3, %v2068_v62 }
 0x1d1   :  { %v2082_v4 = vpop.f32.mrf.mxu2 }
 0x1d7   :  { %v2041_v8 = vpop.f32.mrf.mxu0 }
 0x1d8   :  { %v2042_v63 = vadd.f32 %v2041_v8, %v2029_v6 }
 0x1da   :  { %v2097_v9 = vmax.f32 %v2042_v63, 0.0 }
 0x1dc   :  { %2099 = vst [vmem:[#allocation2] sm:$0xff] %v2097_v9 }
 0x1df   :  { %v2043_v55 = vpop.f32.mrf.mxu0 }
 0x1e7   :  { %v2093_v10 = vpop.f32.mrf.mxu0 }
 0x1e8   :  { %v2094_v11 = vadd.f32 %v2093_v10, %v2081_v45 }
 0x1ea   :  { %v2098_v12 = vmax.f32 %v2094_v11, 0.0 }
 0x1ec   :  { %2100 = vst [vmem:[#allocation2 + $0x8] sm:$0xff] %v2098_v12 }
 0x1ed   :  { %2111 = dma.vmem_to_hbm [thread:$0]  %s2107_s21, 256, %s2109_s24, [#allocation3]  }
 0x1ef   :  { %v2095_v13 = vpop.f32.mrf.mxu0 }
 0x1f0   :  { %3438 = dma.done.wait [#allocation3], 256  }
 0x1f1   :  { %3439 = vsyncadd [#allocation3], 4294967040 }
 0x1f2   :  { %2116 = vsyncpa [#allocation3], 1 }

</bundles_post_ra>
